<compile_context>
chip_gen: v5e
topology: v5e:2x2
jax: 0.10.0
libtpu: 0.0.40
codegen_flags: <defaults>
</compile_context>

<pallas_src>
import functools
import math

import jax
import jax.numpy as jnp
from jax import lax
from jax.experimental import pallas as pl
from jax.experimental.pallas import tpu as pltpu

VMEM = pltpu.MemorySpace.VMEM

CFG = dict(
    vocab_size=100,
    type_vocab_size=2,
    max_position=16,
    hidden=32,
    num_heads=2,
    num_layers=2,
    intermediate=64,
    fc1_out=128,
)


# ----------------------------------------------------------------------------
# Single fused Pallas kernel: embeddings-LN -> L encoder layers -> pooler ->
# fc1 -> ReLU -> fc2 -> Sigmoid.
# ----------------------------------------------------------------------------

def _layernorm(x, gamma, beta):
    """BERT LayerNorm (eps = 1e-12) on the last axis; gamma/beta are (1, H)."""
    mean = jnp.mean(x, axis=-1, keepdims=True)
    var = jnp.mean((x - mean) ** 2, axis=-1, keepdims=True)
    return (x - mean) * lax.rsqrt(var + 1e-12) * gamma + beta


def _bert_fused_kernel(B, S, H, nh, L,
                       emb_ref, mask_ref, eg_ref, eb_ref,
                       wqkv_ref, bqkv_ref, wo_ref, bo_ref,
                       ln1g_ref, ln1b_ref, w1_ref, b1_ref,
                       w2_ref, b2_ref, ln2g_ref, ln2b_ref,
                       pw_ref, pb_ref, f1w_ref, f1b_ref,
                       f2w_ref, f2b_ref,
                       out_ref, ctx_ref):
    f32 = jnp.float32
    Dh = H // nh
    scale = 1.0 / math.sqrt(Dh)

    # Embedding LayerNorm (no residual / no zeros tensor).
    x = _layernorm(emb_ref[...], eg_ref[...], eb_ref[...])          # (B*S, H)
    add_mask = mask_ref[...]                                        # (B, S) additive

    # Dropout layers in the reference module are never applied in forward()
    # (and would be identity in eval mode), so nothing is emitted for them.
    for l in range(L):
        # ---- self-attention ------------------------------------------------
        # Fused Q|K|V projection: one (B*S, H) x (H, 3H) MXU pass.
        qkv = jnp.dot(x, wqkv_ref[l], preferred_element_type=f32) + bqkv_ref[l]
        q = qkv[:, 0 * H:1 * H]
        k = qkv[:, 1 * H:2 * H]
        v = qkv[:, 2 * H:3 * H]

        # Per-(batch, head) attention, statically unrolled, all in VMEM.
        for b in range(B):
            rows = slice(b * S, (b + 1) * S)
            m = add_mask[b:b + 1, :]                                # (1, S)
            for h in range(nh):
                cols = slice(h * Dh, (h + 1) * Dh)
                qb = q[rows, cols]                                  # (S, Dh)
                kb = k[rows, cols]
                vb = v[rows, cols]
                # q @ k^T via contraction on the last dims (no explicit .T).
                s = lax.dot_general(
                    qb, kb, (((1,), (1,)), ((), ())),
                    preferred_element_type=f32) * scale             # (S, S)
                s = s + m
                smax = jnp.max(s, axis=-1, keepdims=True)
                p = jnp.exp(s - smax)
                denom = jnp.sum(p, axis=-1, keepdims=True)
                ctx_bh = jnp.dot(p, vb, preferred_element_type=f32)
                ctx_bh = ctx_bh * pl.reciprocal(denom, approx=True)
                ctx_ref[rows, cols] = ctx_bh

        ctx = ctx_ref[...]                                          # (B*S, H)
        attn_out = jnp.dot(ctx, wo_ref[l], preferred_element_type=f32) + bo_ref[l]
        x = _layernorm(attn_out + x, ln1g_ref[l], ln1b_ref[l])      # residual + LN

        # ---- feed-forward ---------------------------------------------------
        inter = jnp.dot(x, w1_ref[l], preferred_element_type=f32) + b1_ref[l]
        # Exact (erf) GELU, as in BERT.
        inter = 0.5 * inter * (1.0 + lax.erf(inter * 0.7071067811865476))
        ffn = jnp.dot(inter, w2_ref[l], preferred_element_type=f32) + b2_ref[l]
        x = _layernorm(ffn + x, ln2g_ref[l], ln2b_ref[l])           # residual + LN

    # ---- pooler + binary head ----------------------------------------------
    # Computed for all rows (known-good lane-dense shapes), CLS rows selected
    # at store time; the extra rows are a few KFLOP and never leave VMEM.
    pooled = jnp.tanh(jnp.dot(x, pw_ref[...], preferred_element_type=f32)
                      + pb_ref[...])                                # (B*S, H)
    hdn = jnp.maximum(jnp.dot(pooled, f1w_ref[...],
                              preferred_element_type=f32) + f1b_ref[...], 0.0)
    # fc2 (128 -> 1) as elementwise multiply + lane reduction (no N=1 matmul).
    z = jnp.sum(hdn * f2w_ref[...], axis=-1, keepdims=True) + f2b_ref[...]
    prob = 1.0 / (1.0 + jnp.exp(-z))                                # (B*S, 1)
    for b in range(B):
        out_ref[b:b + 1, :] = prob[b * S:b * S + 1, :]


# ----------------------------------------------------------------------------
# Parameters (deterministic synthetic weights, stacked per layer) + wrapper
# ----------------------------------------------------------------------------

def init_params(key, cfg):
    H = cfg["hidden"]
    I = cfg["intermediate"]
    L = cfg["num_layers"]
    F = cfg["fc1_out"]

    def nrm(k, shape):
        return (0.02 * jax.random.normal(k, shape)).astype(jnp.float32)

    ks = iter(jax.random.split(key, 32))
    return {
        "word_emb": nrm(next(ks), (cfg["vocab_size"], H)),
        "pos_emb": nrm(next(ks), (cfg["max_position"], H)),
        "type_emb": nrm(next(ks), (cfg["type_vocab_size"], H)),
        "emb_ln_g": jnp.ones((1, H), jnp.float32),
        "emb_ln_b": jnp.zeros((1, H), jnp.float32),
        # Stacked per-layer parameters; Q|K|V fused along the output dim.
        "wqkv": nrm(next(ks), (L, H, 3 * H)),
        "bqkv": jnp.zeros((L, 1, 3 * H), jnp.float32),
        "wo": nrm(next(ks), (L, H, H)),
        "bo": jnp.zeros((L, 1, H), jnp.float32),
        "ln1_g": jnp.ones((L, 1, H), jnp.float32),
        "ln1_b": jnp.zeros((L, 1, H), jnp.float32),
        "w1": nrm(next(ks), (L, H, I)),
        "b1": jnp.zeros((L, 1, I), jnp.float32),
        "w2": nrm(next(ks), (L, I, H)),
        "b2": jnp.zeros((L, 1, H), jnp.float32),
        "ln2_g": jnp.ones((L, 1, H), jnp.float32),
        "ln2_b": jnp.zeros((L, 1, H), jnp.float32),
        "pooler_w": nrm(next(ks), (H, H)),
        "pooler_b": jnp.zeros((1, H), jnp.float32),
        "fc1_w": nrm(next(ks), (H, F)),
        "fc1_b": jnp.zeros((1, F), jnp.float32),
        "fc2_w_row": nrm(next(ks), (1, F)),   # fc2 weight stored as a row
        "fc2_b": jnp.zeros((1, 1), jnp.float32),
    }


def bert_binery_forward(params, input_ids, masks, type_ids, cfg):
    B, S = input_ids.shape
    H = cfg["hidden"]
    nh = cfg["num_heads"]
    L = cfg["num_layers"]

    # Embedding gathers are plain-JAX glue; everything else is ONE kernel.
    emb = (params["word_emb"][input_ids]
           + params["pos_emb"][jnp.arange(S)][None, :, :]
           + params["type_emb"][type_ids]).astype(jnp.float32)
    emb = emb.reshape(B * S, H)
    # HF-BERT style additive attention mask.
    add_mask = (1.0 - masks.astype(jnp.float32)) * -10000.0          # (B, S)

    kernel = functools.partial(_bert_fused_kernel, B, S, H, nh, L)
    n_in = 22
    return pl.pallas_call(
        kernel,
        out_shape=jax.ShapeDtypeStruct((B, 1), jnp.float32),
        in_specs=[pl.BlockSpec(memory_space=VMEM)] * n_in,
        out_specs=pl.BlockSpec(memory_space=VMEM),
        scratch_shapes=[pltpu.VMEM((B * S, H), jnp.float32)],        # attention ctx
    )(emb, add_mask, params["emb_ln_g"], params["emb_ln_b"],
      params["wqkv"], params["bqkv"], params["wo"], params["bo"],
      params["ln1_g"], params["ln1_b"], params["w1"], params["b1"],
      params["w2"], params["b2"], params["ln2_g"], params["ln2_b"],
      params["pooler_w"], params["pooler_b"],
      params["fc1_w"], params["fc1_b"],
      params["fc2_w_row"], params["fc2_b"])


# ----------------------------------------------------------------------------
# Main
# ----------------------------------------------------------------------------

if __name__ == "__main__":
    key = jax.random.PRNGKey(0)
    pkey, ikey, tkey = jax.random.split(key, 3)

    B, S = 2, 8
    params = init_params(pkey, CFG)

    input_ids = jax.random.randint(ikey, (B, S), 0, CFG["vocab_size"], dtype=jnp.int32)
    # second sequence padded in its last 3 positions
    masks = jnp.array([[1, 1, 1, 1, 1, 1, 1, 1],
                       [1, 1, 1, 1, 1, 0, 0, 0]], dtype=jnp.int32)
    type_ids = jax.random.randint(tkey, (B, S), 0, CFG["type_vocab_size"],
                                  dtype=jnp.int32)

    fwd = jax.jit(functools.partial(bert_binery_forward, cfg=CFG))
    out = jax.block_until_ready(fwd(params, input_ids, masks, type_ids))

    assert out.shape == (B, 1)
    assert bool(jnp.all((out >= 0.0) & (out <= 1.0)))
    print("KERNEL_OK")
</pallas_src>

<mosaic_0001>
module attributes {stable_mosaic.version = 11 : i64} {
  func.func @_bert_fused_kernel(%arg0: memref<16x32xf32, #tpu.memory_space<vmem>>, %arg1: memref<2x8xf32, #tpu.memory_space<vmem>>, %arg2: memref<1x32xf32, #tpu.memory_space<vmem>>, %arg3: memref<1x32xf32, #tpu.memory_space<vmem>>, %arg4: memref<2x32x96xf32, #tpu.memory_space<vmem>>, %arg5: memref<2x1x96xf32, #tpu.memory_space<vmem>>, %arg6: memref<2x32x32xf32, #tpu.memory_space<vmem>>, %arg7: memref<2x1x32xf32, #tpu.memory_space<vmem>>, %arg8: memref<2x1x32xf32, #tpu.memory_space<vmem>>, %arg9: memref<2x1x32xf32, #tpu.memory_space<vmem>>, %arg10: memref<2x32x64xf32, #tpu.memory_space<vmem>>, %arg11: memref<2x1x64xf32, #tpu.memory_space<vmem>>, %arg12: memref<2x64x32xf32, #tpu.memory_space<vmem>>, %arg13: memref<2x1x32xf32, #tpu.memory_space<vmem>>, %arg14: memref<2x1x32xf32, #tpu.memory_space<vmem>>, %arg15: memref<2x1x32xf32, #tpu.memory_space<vmem>>, %arg16: memref<32x32xf32, #tpu.memory_space<vmem>>, %arg17: memref<1x32xf32, #tpu.memory_space<vmem>>, %arg18: memref<32x128xf32, #tpu.memory_space<vmem>>, %arg19: memref<1x128xf32, #tpu.memory_space<vmem>>, %arg20: memref<1x128xf32, #tpu.memory_space<vmem>>, %arg21: memref<1x1xf32, #tpu.memory_space<vmem>>, %arg22: memref<2x1xf32, #tpu.memory_space<vmem>>, %arg23: memref<16x32xf32, #tpu.memory_space<vmem>>) attributes {dimension_semantics = [], scalar_prefetch = 0 : i64, scratch_operands = 1 : i64, tpu.core_type = #tpu.core_type<tc>} {
    %c0 = arith.constant 0 : index
    %c0_0 = arith.constant 0 : index
    %0 = vector.load %arg0[%c0, %c0_0] : memref<16x32xf32, #tpu.memory_space<vmem>>, vector<16x32xf32>
    %c0_1 = arith.constant 0 : index
    %c0_2 = arith.constant 0 : index
    %1 = vector.load %arg2[%c0_1, %c0_2] : memref<1x32xf32, #tpu.memory_space<vmem>>, vector<1x32xf32>
    %c0_3 = arith.constant 0 : index
    %c0_4 = arith.constant 0 : index
    %2 = vector.load %arg3[%c0_3, %c0_4] : memref<1x32xf32, #tpu.memory_space<vmem>>, vector<1x32xf32>
    %cst = arith.constant dense<0.000000e+00> : vector<16xf32>
    %3 = vector.multi_reduction <add>, %0, %cst [1] : vector<16x32xf32> to vector<16xf32>
    %4 = vector.shape_cast %3 : vector<16xf32> to vector<16x1xf32>
    %cst_5 = arith.constant 3.200000e+01 : f32
    %5 = vector.broadcast %cst_5 : f32 to vector<16x1xf32>
    %6 = arith.divf %4, %5 : vector<16x1xf32>
    %7 = vector.broadcast %6 : vector<16x1xf32> to vector<16x32xf32>
    %8 = arith.subf %0, %7 : vector<16x32xf32>
    %9 = arith.mulf %8, %8 : vector<16x32xf32>
    %cst_6 = arith.constant dense<0.000000e+00> : vector<16xf32>
    %10 = vector.multi_reduction <add>, %9, %cst_6 [1] : vector<16x32xf32> to vector<16xf32>
    %11 = vector.shape_cast %10 : vector<16xf32> to vector<16x1xf32>
    %cst_7 = arith.constant 3.200000e+01 : f32
    %12 = vector.broadcast %cst_7 : f32 to vector<16x1xf32>
    %13 = arith.divf %11, %12 : vector<16x1xf32>
    %14 = vector.broadcast %6 : vector<16x1xf32> to vector<16x32xf32>
    %15 = arith.subf %0, %14 : vector<16x32xf32>
    %cst_8 = arith.constant 9.99999996E-13 : f32
    %16 = vector.broadcast %cst_8 : f32 to vector<16x1xf32>
    %17 = arith.addf %13, %16 : vector<16x1xf32>
    %18 = math.rsqrt %17 : vector<16x1xf32>
    %19 = vector.broadcast %18 : vector<16x1xf32> to vector<16x32xf32>
    %20 = arith.mulf %15, %19 : vector<16x32xf32>
    %21 = vector.broadcast %1 : vector<1x32xf32> to vector<16x32xf32>
    %22 = arith.mulf %20, %21 : vector<16x32xf32>
    %23 = vector.broadcast %2 : vector<1x32xf32> to vector<16x32xf32>
    %24 = arith.addf %22, %23 : vector<16x32xf32>
    %c0_9 = arith.constant 0 : index
    %c0_10 = arith.constant 0 : index
    %25 = vector.load %arg1[%c0_9, %c0_10] : memref<2x8xf32, #tpu.memory_space<vmem>>, vector<2x8xf32>
    %c0_11 = arith.constant 0 : index
    %c0_12 = arith.constant 0 : index
    %c0_13 = arith.constant 0 : index
    %26 = vector.load %arg4[%c0_11, %c0_12, %c0_13] : memref<2x32x96xf32, #tpu.memory_space<vmem>>, vector<1x32x96xf32>
    %27 = vector.shape_cast %26 : vector<1x32x96xf32> to vector<32x96xf32>
    %cst_14 = arith.constant dense<0.000000e+00> : vector<16x96xf32>
    %28 = tpu.matmul %24, %27, %cst_14 {dimension_numbers = #tpu.dot_dimension_numbers<[1], [0], [0], [1], [0, 0, 1, 1], [], []>} : vector<16x32xf32>, vector<32x96xf32>, vector<16x96xf32> -> vector<16x96xf32>
    %c0_15 = arith.constant 0 : index
    %c0_16 = arith.constant 0 : index
    %c0_17 = arith.constant 0 : index
    %29 = vector.load %arg5[%c0_15, %c0_16, %c0_17] : memref<2x1x96xf32, #tpu.memory_space<vmem>>, vector<1x1x96xf32>
    %30 = vector.shape_cast %29 : vector<1x1x96xf32> to vector<1x96xf32>
    %31 = vector.broadcast %30 : vector<1x96xf32> to vector<16x96xf32>
    %32 = arith.addf %28, %31 : vector<16x96xf32>
    %33 = vector.extract_strided_slice %32 {offsets = [0, 0], sizes = [16, 32], strides = [1, 1]} : vector<16x96xf32> to vector<16x32xf32>
    %34 = vector.extract_strided_slice %32 {offsets = [0, 32], sizes = [16, 32], strides = [1, 1]} : vector<16x96xf32> to vector<16x32xf32>
    %35 = vector.extract_strided_slice %32 {offsets = [0, 64], sizes = [16, 32], strides = [1, 1]} : vector<16x96xf32> to vector<16x32xf32>
    %36 = vector.extract_strided_slice %25 {offsets = [0, 0], sizes = [1, 8], strides = [1, 1]} : vector<2x8xf32> to vector<1x8xf32>
    %37 = vector.extract_strided_slice %33 {offsets = [0, 0], sizes = [8, 16], strides = [1, 1]} : vector<16x32xf32> to vector<8x16xf32>
    %38 = vector.extract_strided_slice %34 {offsets = [0, 0], sizes = [8, 16], strides = [1, 1]} : vector<16x32xf32> to vector<8x16xf32>
    %39 = vector.extract_strided_slice %35 {offsets = [0, 0], sizes = [8, 16], strides = [1, 1]} : vector<16x32xf32> to vector<8x16xf32>
    %cst_18 = arith.constant dense<0.000000e+00> : vector<8x8xf32>
    %40 = tpu.matmul %37, %38, %cst_18 {dimension_numbers = #tpu.dot_dimension_numbers<[1], [1], [0], [0], [0, 0, 1, 0], [], []>} : vector<8x16xf32>, vector<8x16xf32>, vector<8x8xf32> -> vector<8x8xf32>
    %cst_19 = arith.constant 2.500000e-01 : f32
    %41 = vector.broadcast %cst_19 : f32 to vector<8x8xf32>
    %42 = arith.mulf %40, %41 : vector<8x8xf32>
    %43 = vector.broadcast %36 : vector<1x8xf32> to vector<8x8xf32>
    %44 = arith.addf %42, %43 : vector<8x8xf32>
    %cst_20 = arith.constant dense<0xFF800000> : vector<8xf32>
    %45 = vector.multi_reduction <maximumf>, %44, %cst_20 [1] : vector<8x8xf32> to vector<8xf32>
    %46 = vector.shape_cast %45 : vector<8xf32> to vector<8x1xf32>
    %47 = vector.broadcast %46 : vector<8x1xf32> to vector<8x8xf32>
    %48 = arith.subf %44, %47 : vector<8x8xf32>
    %49 = math.exp %48 : vector<8x8xf32>
    %cst_21 = arith.constant dense<0.000000e+00> : vector<8xf32>
    %50 = vector.multi_reduction <add>, %49, %cst_21 [1] : vector<8x8xf32> to vector<8xf32>
    %51 = vector.shape_cast %50 : vector<8xf32> to vector<8x1xf32>
    %cst_22 = arith.constant dense<0.000000e+00> : vector<8x16xf32>
    %52 = tpu.matmul %49, %39, %cst_22 {dimension_numbers = #tpu.dot_dimension_numbers<[1], [0], [0], [1], [0, 0, 1, 1], [], []>} : vector<8x8xf32>, vector<8x16xf32>, vector<8x16xf32> -> vector<8x16xf32>
    %53 = tpu.reciprocal %51 {approx = true} : vector<8x1xf32> -> vector<8x1xf32>
    %54 = vector.broadcast %53 : vector<8x1xf32> to vector<8x16xf32>
    %55 = arith.mulf %52, %54 : vector<8x16xf32>
    %c0_23 = arith.constant 0 : index
    %c0_24 = arith.constant 0 : index
    %56 = vector.load %arg23[%c0_23, %c0_24] : memref<16x32xf32, #tpu.memory_space<vmem>>, vector<8x16xf32>
    tpu.vector_store %arg23[%c0_23, %c0_24], %55 {strides = array<i32>} : memref<16x32xf32, #tpu.memory_space<vmem>>, vector<8x16xf32>,
    %57 = vector.extract_strided_slice %33 {offsets = [0, 16], sizes = [8, 16], strides = [1, 1]} : vector<16x32xf32> to vector<8x16xf32>
    %58 = vector.extract_strided_slice %34 {offsets = [0, 16], sizes = [8, 16], strides = [1, 1]} : vector<16x32xf32> to vector<8x16xf32>
    %59 = vector.extract_strided_slice %35 {offsets = [0, 16], sizes = [8, 16], strides = [1, 1]} : vector<16x32xf32> to vector<8x16xf32>
    %cst_25 = arith.constant dense<0.000000e+00> : vector<8x8xf32>
    %60 = tpu.matmul %57, %58, %cst_25 {dimension_numbers = #tpu.dot_dimension_numbers<[1], [1], [0], [0], [0, 0, 1, 0], [], []>} : vector<8x16xf32>, vector<8x16xf32>, vector<8x8xf32> -> vector<8x8xf32>
    %cst_26 = arith.constant 2.500000e-01 : f32
    %61 = vector.broadcast %cst_26 : f32 to vector<8x8xf32>
    %62 = arith.mulf %60, %61 : vector<8x8xf32>
    %63 = vector.broadcast %36 : vector<1x8xf32> to vector<8x8xf32>
    %64 = arith.addf %62, %63 : vector<8x8xf32>
    %cst_27 = arith.constant dense<0xFF800000> : vector<8xf32>
    %65 = vector.multi_reduction <maximumf>, %64, %cst_27 [1] : vector<8x8xf32> to vector<8xf32>
    %66 = vector.shape_cast %65 : vector<8xf32> to vector<8x1xf32>
    %67 = vector.broadcast %66 : vector<8x1xf32> to vector<8x8xf32>
    %68 = arith.subf %64, %67 : vector<8x8xf32>
    %69 = math.exp %68 : vector<8x8xf32>
    %cst_28 = arith.constant dense<0.000000e+00> : vector<8xf32>
    %70 = vector.multi_reduction <add>, %69, %cst_28 [1] : vector<8x8xf32> to vector<8xf32>
    %71 = vector.shape_cast %70 : vector<8xf32> to vector<8x1xf32>
    %cst_29 = arith.constant dense<0.000000e+00> : vector<8x16xf32>
    %72 = tpu.matmul %69, %59, %cst_29 {dimension_numbers = #tpu.dot_dimension_numbers<[1], [0], [0], [1], [0, 0, 1, 1], [], []>} : vector<8x8xf32>, vector<8x16xf32>, vector<8x16xf32> -> vector<8x16xf32>
    %73 = tpu.reciprocal %71 {approx = true} : vector<8x1xf32> -> vector<8x1xf32>
    %74 = vector.broadcast %73 : vector<8x1xf32> to vector<8x16xf32>
    %75 = arith.mulf %72, %74 : vector<8x16xf32>
    %c0_30 = arith.constant 0 : index
    %c16 = arith.constant 16 : index
    %76 = vector.load %arg23[%c0_30, %c16] : memref<16x32xf32, #tpu.memory_space<vmem>>, vector<8x16xf32>
    tpu.vector_store %arg23[%c0_30, %c16], %75 {strides = array<i32>} : memref<16x32xf32, #tpu.memory_space<vmem>>, vector<8x16xf32>,
    %77 = vector.extract_strided_slice %25 {offsets = [1, 0], sizes = [1, 8], strides = [1, 1]} : vector<2x8xf32> to vector<1x8xf32>
    %78 = vector.extract_strided_slice %33 {offsets = [8, 0], sizes = [8, 16], strides = [1, 1]} : vector<16x32xf32> to vector<8x16xf32>
    %79 = vector.extract_strided_slice %34 {offsets = [8, 0], sizes = [8, 16], strides = [1, 1]} : vector<16x32xf32> to vector<8x16xf32>
    %80 = vector.extract_strided_slice %35 {offsets = [8, 0], sizes = [8, 16], strides = [1, 1]} : vector<16x32xf32> to vector<8x16xf32>
    %cst_31 = arith.constant dense<0.000000e+00> : vector<8x8xf32>
    %81 = tpu.matmul %78, %79, %cst_31 {dimension_numbers = #tpu.dot_dimension_numbers<[1], [1], [0], [0], [0, 0, 1, 0], [], []>} : vector<8x16xf32>, vector<8x16xf32>, vector<8x8xf32> -> vector<8x8xf32>
    %cst_32 = arith.constant 2.500000e-01 : f32
    %82 = vector.broadcast %cst_32 : f32 to vector<8x8xf32>
    %83 = arith.mulf %81, %82 : vector<8x8xf32>
    %84 = vector.broadcast %77 : vector<1x8xf32> to vector<8x8xf32>
    %85 = arith.addf %83, %84 : vector<8x8xf32>
    %cst_33 = arith.constant dense<0xFF800000> : vector<8xf32>
    %86 = vector.multi_reduction <maximumf>, %85, %cst_33 [1] : vector<8x8xf32> to vector<8xf32>
    %87 = vector.shape_cast %86 : vector<8xf32> to vector<8x1xf32>
    %88 = vector.broadcast %87 : vector<8x1xf32> to vector<8x8xf32>
    %89 = arith.subf %85, %88 : vector<8x8xf32>
    %90 = math.exp %89 : vector<8x8xf32>
    %cst_34 = arith.constant dense<0.000000e+00> : vector<8xf32>
    %91 = vector.multi_reduction <add>, %90, %cst_34 [1] : vector<8x8xf32> to vector<8xf32>
    %92 = vector.shape_cast %91 : vector<8xf32> to vector<8x1xf32>
    %cst_35 = arith.constant dense<0.000000e+00> : vector<8x16xf32>
    %93 = tpu.matmul %90, %80, %cst_35 {dimension_numbers = #tpu.dot_dimension_numbers<[1], [0], [0], [1], [0, 0, 1, 1], [], []>} : vector<8x8xf32>, vector<8x16xf32>, vector<8x16xf32> -> vector<8x16xf32>
    %94 = tpu.reciprocal %92 {approx = true} : vector<8x1xf32> -> vector<8x1xf32>
    %95 = vector.broadcast %94 : vector<8x1xf32> to vector<8x16xf32>
    %96 = arith.mulf %93, %95 : vector<8x16xf32>
    %c8 = arith.constant 8 : index
    %c0_36 = arith.constant 0 : index
    %97 = vector.load %arg23[%c8, %c0_36] : memref<16x32xf32, #tpu.memory_space<vmem>>, vector<8x16xf32>
    tpu.vector_store %arg23[%c8, %c0_36], %96 {strides = array<i32>} : memref<16x32xf32, #tpu.memory_space<vmem>>, vector<8x16xf32>,
    %98 = vector.extract_strided_slice %33 {offsets = [8, 16], sizes = [8, 16], strides = [1, 1]} : vector<16x32xf32> to vector<8x16xf32>
    %99 = vector.extract_strided_slice %34 {offsets = [8, 16], sizes = [8, 16], strides = [1, 1]} : vector<16x32xf32> to vector<8x16xf32>
    %100 = vector.extract_strided_slice %35 {offsets = [8, 16], sizes = [8, 16], strides = [1, 1]} : vector<16x32xf32> to vector<8x16xf32>
    %cst_37 = arith.constant dense<0.000000e+00> : vector<8x8xf32>
    %101 = tpu.matmul %98, %99, %cst_37 {dimension_numbers = #tpu.dot_dimension_numbers<[1], [1], [0], [0], [0, 0, 1, 0], [], []>} : vector<8x16xf32>, vector<8x16xf32>, vector<8x8xf32> -> vector<8x8xf32>
    %cst_38 = arith.constant 2.500000e-01 : f32
    %102 = vector.broadcast %cst_38 : f32 to vector<8x8xf32>
    %103 = arith.mulf %101, %102 : vector<8x8xf32>
    %104 = vector.broadcast %77 : vector<1x8xf32> to vector<8x8xf32>
    %105 = arith.addf %103, %104 : vector<8x8xf32>
    %cst_39 = arith.constant dense<0xFF800000> : vector<8xf32>
    %106 = vector.multi_reduction <maximumf>, %105, %cst_39 [1] : vector<8x8xf32> to vector<8xf32>
    %107 = vector.shape_cast %106 : vector<8xf32> to vector<8x1xf32>
    %108 = vector.broadcast %107 : vector<8x1xf32> to vector<8x8xf32>
    %109 = arith.subf %105, %108 : vector<8x8xf32>
    %110 = math.exp %109 : vector<8x8xf32>
    %cst_40 = arith.constant dense<0.000000e+00> : vector<8xf32>
    %111 = vector.multi_reduction <add>, %110, %cst_40 [1] : vector<8x8xf32> to vector<8xf32>
    %112 = vector.shape_cast %111 : vector<8xf32> to vector<8x1xf32>
    %cst_41 = arith.constant dense<0.000000e+00> : vector<8x16xf32>
    %113 = tpu.matmul %110, %100, %cst_41 {dimension_numbers = #tpu.dot_dimension_numbers<[1], [0], [0], [1], [0, 0, 1, 1], [], []>} : vector<8x8xf32>, vector<8x16xf32>, vector<8x16xf32> -> vector<8x16xf32>
    %114 = tpu.reciprocal %112 {approx = true} : vector<8x1xf32> -> vector<8x1xf32>
    %115 = vector.broadcast %114 : vector<8x1xf32> to vector<8x16xf32>
    %116 = arith.mulf %113, %115 : vector<8x16xf32>
    %c8_42 = arith.constant 8 : index
    %c16_43 = arith.constant 16 : index
    %117 = vector.load %arg23[%c8_42, %c16_43] : memref<16x32xf32, #tpu.memory_space<vmem>>, vector<8x16xf32>
    tpu.vector_store %arg23[%c8_42, %c16_43], %116 {strides = array<i32>} : memref<16x32xf32, #tpu.memory_space<vmem>>, vector<8x16xf32>,
    %c0_44 = arith.constant 0 : index
    %c0_45 = arith.constant 0 : index
    %118 = vector.load %arg23[%c0_44, %c0_45] : memref<16x32xf32, #tpu.memory_space<vmem>>, vector<16x32xf32>
    %c0_46 = arith.constant 0 : index
    %c0_47 = arith.constant 0 : index
    %c0_48 = arith.constant 0 : index
    %119 = vector.load %arg6[%c0_46, %c0_47, %c0_48] : memref<2x32x32xf32, #tpu.memory_space<vmem>>, vector<1x32x32xf32>
    %120 = vector.shape_cast %119 : vector<1x32x32xf32> to vector<32x32xf32>
    %cst_49 = arith.constant dense<0.000000e+00> : vector<16x32xf32>
    %121 = tpu.matmul %118, %120, %cst_49 {dimension_numbers = #tpu.dot_dimension_numbers<[1], [0], [0], [1], [0, 0, 1, 1], [], []>} : vector<16x32xf32>, vector<32x32xf32>, vector<16x32xf32> -> vector<16x32xf32>
    %c0_50 = arith.constant 0 : index
    %c0_51 = arith.constant 0 : index
    %c0_52 = arith.constant 0 : index
    %122 = vector.load %arg7[%c0_50, %c0_51, %c0_52] : memref<2x1x32xf32, #tpu.memory_space<vmem>>, vector<1x1x32xf32>
    %123 = vector.shape_cast %122 : vector<1x1x32xf32> to vector<1x32xf32>
    %124 = vector.broadcast %123 : vector<1x32xf32> to vector<16x32xf32>
    %125 = arith.addf %121, %124 : vector<16x32xf32>
    %126 = arith.addf %125, %24 : vector<16x32xf32>
    %c0_53 = arith.constant 0 : index
    %c0_54 = arith.constant 0 : index
    %c0_55 = arith.constant 0 : index
    %127 = vector.load %arg8[%c0_53, %c0_54, %c0_55] : memref<2x1x32xf32, #tpu.memory_space<vmem>>, vector<1x1x32xf32>
    %128 = vector.shape_cast %127 : vector<1x1x32xf32> to vector<1x32xf32>
    %c0_56 = arith.constant 0 : index
    %c0_57 = arith.constant 0 : index
    %c0_58 = arith.constant 0 : index
    %129 = vector.load %arg9[%c0_56, %c0_57, %c0_58] : memref<2x1x32xf32, #tpu.memory_space<vmem>>, vector<1x1x32xf32>
    %130 = vector.shape_cast %129 : vector<1x1x32xf32> to vector<1x32xf32>
    %cst_59 = arith.constant dense<0.000000e+00> : vector<16xf32>
    %131 = vector.multi_reduction <add>, %126, %cst_59 [1] : vector<16x32xf32> to vector<16xf32>
    %132 = vector.shape_cast %131 : vector<16xf32> to vector<16x1xf32>
    %cst_60 = arith.constant 3.200000e+01 : f32
    %133 = vector.broadcast %cst_60 : f32 to vector<16x1xf32>
    %134 = arith.divf %132, %133 : vector<16x1xf32>
    %135 = vector.broadcast %134 : vector<16x1xf32> to vector<16x32xf32>
    %136 = arith.subf %126, %135 : vector<16x32xf32>
    %137 = arith.mulf %136, %136 : vector<16x32xf32>
    %cst_61 = arith.constant dense<0.000000e+00> : vector<16xf32>
    %138 = vector.multi_reduction <add>, %137, %cst_61 [1] : vector<16x32xf32> to vector<16xf32>
    %139 = vector.shape_cast %138 : vector<16xf32> to vector<16x1xf32>
    %cst_62 = arith.constant 3.200000e+01 : f32
    %140 = vector.broadcast %cst_62 : f32 to vector<16x1xf32>
    %141 = arith.divf %139, %140 : vector<16x1xf32>
    %142 = vector.broadcast %134 : vector<16x1xf32> to vector<16x32xf32>
    %143 = arith.subf %126, %142 : vector<16x32xf32>
    %cst_63 = arith.constant 9.99999996E-13 : f32
    %144 = vector.broadcast %cst_63 : f32 to vector<16x1xf32>
    %145 = arith.addf %141, %144 : vector<16x1xf32>
    %146 = math.rsqrt %145 : vector<16x1xf32>
    %147 = vector.broadcast %146 : vector<16x1xf32> to vector<16x32xf32>
    %148 = arith.mulf %143, %147 : vector<16x32xf32>
    %149 = vector.broadcast %128 : vector<1x32xf32> to vector<16x32xf32>
    %150 = arith.mulf %148, %149 : vector<16x32xf32>
    %151 = vector.broadcast %130 : vector<1x32xf32> to vector<16x32xf32>
    %152 = arith.addf %150, %151 : vector<16x32xf32>
    %c0_64 = arith.constant 0 : index
    %c0_65 = arith.constant 0 : index
    %c0_66 = arith.constant 0 : index
    %153 = vector.load %arg10[%c0_64, %c0_65, %c0_66] : memref<2x32x64xf32, #tpu.memory_space<vmem>>, vector<1x32x64xf32>
    %154 = vector.shape_cast %153 : vector<1x32x64xf32> to vector<32x64xf32>
    %cst_67 = arith.constant dense<0.000000e+00> : vector<16x64xf32>
    %155 = tpu.matmul %152, %154, %cst_67 {dimension_numbers = #tpu.dot_dimension_numbers<[1], [0], [0], [1], [0, 0, 1, 1], [], []>} : vector<16x32xf32>, vector<32x64xf32>, vector<16x64xf32> -> vector<16x64xf32>
    %c0_68 = arith.constant 0 : index
    %c0_69 = arith.constant 0 : index
    %c0_70 = arith.constant 0 : index
    %156 = vector.load %arg11[%c0_68, %c0_69, %c0_70] : memref<2x1x64xf32, #tpu.memory_space<vmem>>, vector<1x1x64xf32>
    %157 = vector.shape_cast %156 : vector<1x1x64xf32> to vector<1x64xf32>
    %158 = vector.broadcast %157 : vector<1x64xf32> to vector<16x64xf32>
    %159 = arith.addf %155, %158 : vector<16x64xf32>
    %cst_71 = arith.constant 5.000000e-01 : f32
    %160 = vector.broadcast %cst_71 : f32 to vector<16x64xf32>
    %161 = arith.mulf %160, %159 : vector<16x64xf32>
    %cst_72 = arith.constant 0.707106769 : f32
    %162 = vector.broadcast %cst_72 : f32 to vector<16x64xf32>
    %163 = arith.mulf %159, %162 : vector<16x64xf32>
    %164 = math.erf %163 : vector<16x64xf32>
    %cst_73 = arith.constant 1.000000e+00 : f32
    %165 = vector.broadcast %cst_73 : f32 to vector<16x64xf32>
    %166 = arith.addf %165, %164 : vector<16x64xf32>
    %167 = arith.mulf %161, %166 : vector<16x64xf32>
    %c0_74 = arith.constant 0 : index
    %c0_75 = arith.constant 0 : index
    %c0_76 = arith.constant 0 : index
    %168 = vector.load %arg12[%c0_74, %c0_75, %c0_76] : memref<2x64x32xf32, #tpu.memory_space<vmem>>, vector<1x64x32xf32>
    %169 = vector.shape_cast %168 : vector<1x64x32xf32> to vector<64x32xf32>
    %cst_77 = arith.constant dense<0.000000e+00> : vector<16x32xf32>
    %170 = tpu.matmul %167, %169, %cst_77 {dimension_numbers = #tpu.dot_dimension_numbers<[1], [0], [0], [1], [0, 0, 1, 1], [], []>} : vector<16x64xf32>, vector<64x32xf32>, vector<16x32xf32> -> vector<16x32xf32>
    %c0_78 = arith.constant 0 : index
    %c0_79 = arith.constant 0 : index
    %c0_80 = arith.constant 0 : index
    %171 = vector.load %arg13[%c0_78, %c0_79, %c0_80] : memref<2x1x32xf32, #tpu.memory_space<vmem>>, vector<1x1x32xf32>
    %172 = vector.shape_cast %171 : vector<1x1x32xf32> to vector<1x32xf32>
    %173 = vector.broadcast %172 : vector<1x32xf32> to vector<16x32xf32>
    %174 = arith.addf %170, %173 : vector<16x32xf32>
    %175 = arith.addf %174, %152 : vector<16x32xf32>
    %c0_81 = arith.constant 0 : index
    %c0_82 = arith.constant 0 : index
    %c0_83 = arith.constant 0 : index
    %176 = vector.load %arg14[%c0_81, %c0_82, %c0_83] : memref<2x1x32xf32, #tpu.memory_space<vmem>>, vector<1x1x32xf32>
    %177 = vector.shape_cast %176 : vector<1x1x32xf32> to vector<1x32xf32>
    %c0_84 = arith.constant 0 : index
    %c0_85 = arith.constant 0 : index
    %c0_86 = arith.constant 0 : index
    %178 = vector.load %arg15[%c0_84, %c0_85, %c0_86] : memref<2x1x32xf32, #tpu.memory_space<vmem>>, vector<1x1x32xf32>
    %179 = vector.shape_cast %178 : vector<1x1x32xf32> to vector<1x32xf32>
    %cst_87 = arith.constant dense<0.000000e+00> : vector<16xf32>
    %180 = vector.multi_reduction <add>, %175, %cst_87 [1] : vector<16x32xf32> to vector<16xf32>
    %181 = vector.shape_cast %180 : vector<16xf32> to vector<16x1xf32>
    %cst_88 = arith.constant 3.200000e+01 : f32
    %182 = vector.broadcast %cst_88 : f32 to vector<16x1xf32>
    %183 = arith.divf %181, %182 : vector<16x1xf32>
    %184 = vector.broadcast %183 : vector<16x1xf32> to vector<16x32xf32>
    %185 = arith.subf %175, %184 : vector<16x32xf32>
    %186 = arith.mulf %185, %185 : vector<16x32xf32>
    %cst_89 = arith.constant dense<0.000000e+00> : vector<16xf32>
    %187 = vector.multi_reduction <add>, %186, %cst_89 [1] : vector<16x32xf32> to vector<16xf32>
    %188 = vector.shape_cast %187 : vector<16xf32> to vector<16x1xf32>
    %cst_90 = arith.constant 3.200000e+01 : f32
    %189 = vector.broadcast %cst_90 : f32 to vector<16x1xf32>
    %190 = arith.divf %188, %189 : vector<16x1xf32>
    %191 = vector.broadcast %183 : vector<16x1xf32> to vector<16x32xf32>
    %192 = arith.subf %175, %191 : vector<16x32xf32>
    %cst_91 = arith.constant 9.99999996E-13 : f32
    %193 = vector.broadcast %cst_91 : f32 to vector<16x1xf32>
    %194 = arith.addf %190, %193 : vector<16x1xf32>
    %195 = math.rsqrt %194 : vector<16x1xf32>
    %196 = vector.broadcast %195 : vector<16x1xf32> to vector<16x32xf32>
    %197 = arith.mulf %192, %196 : vector<16x32xf32>
    %198 = vector.broadcast %177 : vector<1x32xf32> to vector<16x32xf32>
    %199 = arith.mulf %197, %198 : vector<16x32xf32>
    %200 = vector.broadcast %179 : vector<1x32xf32> to vector<16x32xf32>
    %201 = arith.addf %199, %200 : vector<16x32xf32>
    %c1 = arith.constant 1 : index
    %c0_92 = arith.constant 0 : index
    %c0_93 = arith.constant 0 : index
    %202 = vector.load %arg4[%c1, %c0_92, %c0_93] : memref<2x32x96xf32, #tpu.memory_space<vmem>>, vector<1x32x96xf32>
    %203 = vector.shape_cast %202 : vector<1x32x96xf32> to vector<32x96xf32>
    %cst_94 = arith.constant dense<0.000000e+00> : vector<16x96xf32>
    %204 = tpu.matmul %201, %203, %cst_94 {dimension_numbers = #tpu.dot_dimension_numbers<[1], [0], [0], [1], [0, 0, 1, 1], [], []>} : vector<16x32xf32>, vector<32x96xf32>, vector<16x96xf32> -> vector<16x96xf32>
    %c1_95 = arith.constant 1 : index
    %c0_96 = arith.constant 0 : index
    %c0_97 = arith.constant 0 : index
    %205 = vector.load %arg5[%c1_95, %c0_96, %c0_97] : memref<2x1x96xf32, #tpu.memory_space<vmem>>, vector<1x1x96xf32>
    %206 = vector.shape_cast %205 : vector<1x1x96xf32> to vector<1x96xf32>
    %207 = vector.broadcast %206 : vector<1x96xf32> to vector<16x96xf32>
    %208 = arith.addf %204, %207 : vector<16x96xf32>
    %209 = vector.extract_strided_slice %208 {offsets = [0, 0], sizes = [16, 32], strides = [1, 1]} : vector<16x96xf32> to vector<16x32xf32>
    %210 = vector.extract_strided_slice %208 {offsets = [0, 32], sizes = [16, 32], strides = [1, 1]} : vector<16x96xf32> to vector<16x32xf32>
    %211 = vector.extract_strided_slice %208 {offsets = [0, 64], sizes = [16, 32], strides = [1, 1]} : vector<16x96xf32> to vector<16x32xf32>
    %212 = vector.extract_strided_slice %25 {offsets = [0, 0], sizes = [1, 8], strides = [1, 1]} : vector<2x8xf32> to vector<1x8xf32>
    %213 = vector.extract_strided_slice %209 {offsets = [0, 0], sizes = [8, 16], strides = [1, 1]} : vector<16x32xf32> to vector<8x16xf32>
    %214 = vector.extract_strided_slice %210 {offsets = [0, 0], sizes = [8, 16], strides = [1, 1]} : vector<16x32xf32> to vector<8x16xf32>
    %215 = vector.extract_strided_slice %211 {offsets = [0, 0], sizes = [8, 16], strides = [1, 1]} : vector<16x32xf32> to vector<8x16xf32>
    %cst_98 = arith.constant dense<0.000000e+00> : vector<8x8xf32>
    %216 = tpu.matmul %213, %214, %cst_98 {dimension_numbers = #tpu.dot_dimension_numbers<[1], [1], [0], [0], [0, 0, 1, 0], [], []>} : vector<8x16xf32>, vector<8x16xf32>, vector<8x8xf32> -> vector<8x8xf32>
    %cst_99 = arith.constant 2.500000e-01 : f32
    %217 = vector.broadcast %cst_99 : f32 to vector<8x8xf32>
    %218 = arith.mulf %216, %217 : vector<8x8xf32>
    %219 = vector.broadcast %212 : vector<1x8xf32> to vector<8x8xf32>
    %220 = arith.addf %218, %219 : vector<8x8xf32>
    %cst_100 = arith.constant dense<0xFF800000> : vector<8xf32>
    %221 = vector.multi_reduction <maximumf>, %220, %cst_100 [1] : vector<8x8xf32> to vector<8xf32>
    %222 = vector.shape_cast %221 : vector<8xf32> to vector<8x1xf32>
    %223 = vector.broadcast %222 : vector<8x1xf32> to vector<8x8xf32>
    %224 = arith.subf %220, %223 : vector<8x8xf32>
    %225 = math.exp %224 : vector<8x8xf32>
    %cst_101 = arith.constant dense<0.000000e+00> : vector<8xf32>
    %226 = vector.multi_reduction <add>, %225, %cst_101 [1] : vector<8x8xf32> to vector<8xf32>
    %227 = vector.shape_cast %226 : vector<8xf32> to vector<8x1xf32>
    %cst_102 = arith.constant dense<0.000000e+00> : vector<8x16xf32>
    %228 = tpu.matmul %225, %215, %cst_102 {dimension_numbers = #tpu.dot_dimension_numbers<[1], [0], [0], [1], [0, 0, 1, 1], [], []>} : vector<8x8xf32>, vector<8x16xf32>, vector<8x16xf32> -> vector<8x16xf32>
    %229 = tpu.reciprocal %227 {approx = true} : vector<8x1xf32> -> vector<8x1xf32>
    %230 = vector.broadcast %229 : vector<8x1xf32> to vector<8x16xf32>
    %231 = arith.mulf %228, %230 : vector<8x16xf32>
    %c0_103 = arith.constant 0 : index
    %c0_104 = arith.constant 0 : index
    %232 = vector.load %arg23[%c0_103, %c0_104] : memref<16x32xf32, #tpu.memory_space<vmem>>, vector<8x16xf32>
    tpu.vector_store %arg23[%c0_103, %c0_104], %231 {strides = array<i32>} : memref<16x32xf32, #tpu.memory_space<vmem>>, vector<8x16xf32>,
    %233 = vector.extract_strided_slice %209 {offsets = [0, 16], sizes = [8, 16], strides = [1, 1]} : vector<16x32xf32> to vector<8x16xf32>
    %234 = vector.extract_strided_slice %210 {offsets = [0, 16], sizes = [8, 16], strides = [1, 1]} : vector<16x32xf32> to vector<8x16xf32>
    %235 = vector.extract_strided_slice %211 {offsets = [0, 16], sizes = [8, 16], strides = [1, 1]} : vector<16x32xf32> to vector<8x16xf32>
    %cst_105 = arith.constant dense<0.000000e+00> : vector<8x8xf32>
    %236 = tpu.matmul %233, %234, %cst_105 {dimension_numbers = #tpu.dot_dimension_numbers<[1], [1], [0], [0], [0, 0, 1, 0], [], []>} : vector<8x16xf32>, vector<8x16xf32>, vector<8x8xf32> -> vector<8x8xf32>
    %cst_106 = arith.constant 2.500000e-01 : f32
    %237 = vector.broadcast %cst_106 : f32 to vector<8x8xf32>
    %238 = arith.mulf %236, %237 : vector<8x8xf32>
    %239 = vector.broadcast %212 : vector<1x8xf32> to vector<8x8xf32>
    %240 = arith.addf %238, %239 : vector<8x8xf32>
    %cst_107 = arith.constant dense<0xFF800000> : vector<8xf32>
    %241 = vector.multi_reduction <maximumf>, %240, %cst_107 [1] : vector<8x8xf32> to vector<8xf32>
    %242 = vector.shape_cast %241 : vector<8xf32> to vector<8x1xf32>
    %243 = vector.broadcast %242 : vector<8x1xf32> to vector<8x8xf32>
    %244 = arith.subf %240, %243 : vector<8x8xf32>
    %245 = math.exp %244 : vector<8x8xf32>
    %cst_108 = arith.constant dense<0.000000e+00> : vector<8xf32>
    %246 = vector.multi_reduction <add>, %245, %cst_108 [1] : vector<8x8xf32> to vector<8xf32>
    %247 = vector.shape_cast %246 : vector<8xf32> to vector<8x1xf32>
    %cst_109 = arith.constant dense<0.000000e+00> : vector<8x16xf32>
    %248 = tpu.matmul %245, %235, %cst_109 {dimension_numbers = #tpu.dot_dimension_numbers<[1], [0], [0], [1], [0, 0, 1, 1], [], []>} : vector<8x8xf32>, vector<8x16xf32>, vector<8x16xf32> -> vector<8x16xf32>
    %249 = tpu.reciprocal %247 {approx = true} : vector<8x1xf32> -> vector<8x1xf32>
    %250 = vector.broadcast %249 : vector<8x1xf32> to vector<8x16xf32>
    %251 = arith.mulf %248, %250 : vector<8x16xf32>
    %c0_110 = arith.constant 0 : index
    %c16_111 = arith.constant 16 : index
    %252 = vector.load %arg23[%c0_110, %c16_111] : memref<16x32xf32, #tpu.memory_space<vmem>>, vector<8x16xf32>
    tpu.vector_store %arg23[%c0_110, %c16_111], %251 {strides = array<i32>} : memref<16x32xf32, #tpu.memory_space<vmem>>, vector<8x16xf32>,
    %253 = vector.extract_strided_slice %25 {offsets = [1, 0], sizes = [1, 8], strides = [1, 1]} : vector<2x8xf32> to vector<1x8xf32>
    %254 = vector.extract_strided_slice %209 {offsets = [8, 0], sizes = [8, 16], strides = [1, 1]} : vector<16x32xf32> to vector<8x16xf32>
    %255 = vector.extract_strided_slice %210 {offsets = [8, 0], sizes = [8, 16], strides = [1, 1]} : vector<16x32xf32> to vector<8x16xf32>
    %256 = vector.extract_strided_slice %211 {offsets = [8, 0], sizes = [8, 16], strides = [1, 1]} : vector<16x32xf32> to vector<8x16xf32>
    %cst_112 = arith.constant dense<0.000000e+00> : vector<8x8xf32>
    %257 = tpu.matmul %254, %255, %cst_112 {dimension_numbers = #tpu.dot_dimension_numbers<[1], [1], [0], [0], [0, 0, 1, 0], [], []>} : vector<8x16xf32>, vector<8x16xf32>, vector<8x8xf32> -> vector<8x8xf32>
    %cst_113 = arith.constant 2.500000e-01 : f32
    %258 = vector.broadcast %cst_113 : f32 to vector<8x8xf32>
    %259 = arith.mulf %257, %258 : vector<8x8xf32>
    %260 = vector.broadcast %253 : vector<1x8xf32> to vector<8x8xf32>
    %261 = arith.addf %259, %260 : vector<8x8xf32>
    %cst_114 = arith.constant dense<0xFF800000> : vector<8xf32>
    %262 = vector.multi_reduction <maximumf>, %261, %cst_114 [1] : vector<8x8xf32> to vector<8xf32>
    %263 = vector.shape_cast %262 : vector<8xf32> to vector<8x1xf32>
    %264 = vector.broadcast %263 : vector<8x1xf32> to vector<8x8xf32>
    %265 = arith.subf %261, %264 : vector<8x8xf32>
    %266 = math.exp %265 : vector<8x8xf32>
    %cst_115 = arith.constant dense<0.000000e+00> : vector<8xf32>
    %267 = vector.multi_reduction <add>, %266, %cst_115 [1] : vector<8x8xf32> to vector<8xf32>
    %268 = vector.shape_cast %267 : vector<8xf32> to vector<8x1xf32>
    %cst_116 = arith.constant dense<0.000000e+00> : vector<8x16xf32>
    %269 = tpu.matmul %266, %256, %cst_116 {dimension_numbers = #tpu.dot_dimension_numbers<[1], [0], [0], [1], [0, 0, 1, 1], [], []>} : vector<8x8xf32>, vector<8x16xf32>, vector<8x16xf32> -> vector<8x16xf32>
    %270 = tpu.reciprocal %268 {approx = true} : vector<8x1xf32> -> vector<8x1xf32>
    %271 = vector.broadcast %270 : vector<8x1xf32> to vector<8x16xf32>
    %272 = arith.mulf %269, %271 : vector<8x16xf32>
    %c8_117 = arith.constant 8 : index
    %c0_118 = arith.constant 0 : index
    %273 = vector.load %arg23[%c8_117, %c0_118] : memref<16x32xf32, #tpu.memory_space<vmem>>, vector<8x16xf32>
    tpu.vector_store %arg23[%c8_117, %c0_118], %272 {strides = array<i32>} : memref<16x32xf32, #tpu.memory_space<vmem>>, vector<8x16xf32>,
    %274 = vector.extract_strided_slice %209 {offsets = [8, 16], sizes = [8, 16], strides = [1, 1]} : vector<16x32xf32> to vector<8x16xf32>
    %275 = vector.extract_strided_slice %210 {offsets = [8, 16], sizes = [8, 16], strides = [1, 1]} : vector<16x32xf32> to vector<8x16xf32>
    %276 = vector.extract_strided_slice %211 {offsets = [8, 16], sizes = [8, 16], strides = [1, 1]} : vector<16x32xf32> to vector<8x16xf32>
    %cst_119 = arith.constant dense<0.000000e+00> : vector<8x8xf32>
    %277 = tpu.matmul %274, %275, %cst_119 {dimension_numbers = #tpu.dot_dimension_numbers<[1], [1], [0], [0], [0, 0, 1, 0], [], []>} : vector<8x16xf32>, vector<8x16xf32>, vector<8x8xf32> -> vector<8x8xf32>
    %cst_120 = arith.constant 2.500000e-01 : f32
    %278 = vector.broadcast %cst_120 : f32 to vector<8x8xf32>
    %279 = arith.mulf %277, %278 : vector<8x8xf32>
    %280 = vector.broadcast %253 : vector<1x8xf32> to vector<8x8xf32>
    %281 = arith.addf %279, %280 : vector<8x8xf32>
    %cst_121 = arith.constant dense<0xFF800000> : vector<8xf32>
    %282 = vector.multi_reduction <maximumf>, %281, %cst_121 [1] : vector<8x8xf32> to vector<8xf32>
    %283 = vector.shape_cast %282 : vector<8xf32> to vector<8x1xf32>
    %284 = vector.broadcast %283 : vector<8x1xf32> to vector<8x8xf32>
    %285 = arith.subf %281, %284 : vector<8x8xf32>
    %286 = math.exp %285 : vector<8x8xf32>
    %cst_122 = arith.constant dense<0.000000e+00> : vector<8xf32>
    %287 = vector.multi_reduction <add>, %286, %cst_122 [1] : vector<8x8xf32> to vector<8xf32>
    %288 = vector.shape_cast %287 : vector<8xf32> to vector<8x1xf32>
    %cst_123 = arith.constant dense<0.000000e+00> : vector<8x16xf32>
    %289 = tpu.matmul %286, %276, %cst_123 {dimension_numbers = #tpu.dot_dimension_numbers<[1], [0], [0], [1], [0, 0, 1, 1], [], []>} : vector<8x8xf32>, vector<8x16xf32>, vector<8x16xf32> -> vector<8x16xf32>
    %290 = tpu.reciprocal %288 {approx = true} : vector<8x1xf32> -> vector<8x1xf32>
    %291 = vector.broadcast %290 : vector<8x1xf32> to vector<8x16xf32>
    %292 = arith.mulf %289, %291 : vector<8x16xf32>
    %c8_124 = arith.constant 8 : index
    %c16_125 = arith.constant 16 : index
    %293 = vector.load %arg23[%c8_124, %c16_125] : memref<16x32xf32, #tpu.memory_space<vmem>>, vector<8x16xf32>
    tpu.vector_store %arg23[%c8_124, %c16_125], %292 {strides = array<i32>} : memref<16x32xf32, #tpu.memory_space<vmem>>, vector<8x16xf32>,
    %c0_126 = arith.constant 0 : index
    %c0_127 = arith.constant 0 : index
    %294 = vector.load %arg23[%c0_126, %c0_127] : memref<16x32xf32, #tpu.memory_space<vmem>>, vector<16x32xf32>
    %c1_128 = arith.constant 1 : index
    %c0_129 = arith.constant 0 : index
    %c0_130 = arith.constant 0 : index
    %295 = vector.load %arg6[%c1_128, %c0_129, %c0_130] : memref<2x32x32xf32, #tpu.memory_space<vmem>>, vector<1x32x32xf32>
    %296 = vector.shape_cast %295 : vector<1x32x32xf32> to vector<32x32xf32>
    %cst_131 = arith.constant dense<0.000000e+00> : vector<16x32xf32>
    %297 = tpu.matmul %294, %296, %cst_131 {dimension_numbers = #tpu.dot_dimension_numbers<[1], [0], [0], [1], [0, 0, 1, 1], [], []>} : vector<16x32xf32>, vector<32x32xf32>, vector<16x32xf32> -> vector<16x32xf32>
    %c1_132 = arith.constant 1 : index
    %c0_133 = arith.constant 0 : index
    %c0_134 = arith.constant 0 : index
    %298 = vector.load %arg7[%c1_132, %c0_133, %c0_134] : memref<2x1x32xf32, #tpu.memory_space<vmem>>, vector<1x1x32xf32>
    %299 = vector.shape_cast %298 : vector<1x1x32xf32> to vector<1x32xf32>
    %300 = vector.broadcast %299 : vector<1x32xf32> to vector<16x32xf32>
    %301 = arith.addf %297, %300 : vector<16x32xf32>
    %302 = arith.addf %301, %201 : vector<16x32xf32>
    %c1_135 = arith.constant 1 : index
    %c0_136 = arith.constant 0 : index
    %c0_137 = arith.constant 0 : index
    %303 = vector.load %arg8[%c1_135, %c0_136, %c0_137] : memref<2x1x32xf32, #tpu.memory_space<vmem>>, vector<1x1x32xf32>
    %304 = vector.shape_cast %303 : vector<1x1x32xf32> to vector<1x32xf32>
    %c1_138 = arith.constant 1 : index
    %c0_139 = arith.constant 0 : index
    %c0_140 = arith.constant 0 : index
    %305 = vector.load %arg9[%c1_138, %c0_139, %c0_140] : memref<2x1x32xf32, #tpu.memory_space<vmem>>, vector<1x1x32xf32>
    %306 = vector.shape_cast %305 : vector<1x1x32xf32> to vector<1x32xf32>
    %cst_141 = arith.constant dense<0.000000e+00> : vector<16xf32>
    %307 = vector.multi_reduction <add>, %302, %cst_141 [1] : vector<16x32xf32> to vector<16xf32>
    %308 = vector.shape_cast %307 : vector<16xf32> to vector<16x1xf32>
    %cst_142 = arith.constant 3.200000e+01 : f32
    %309 = vector.broadcast %cst_142 : f32 to vector<16x1xf32>
    %310 = arith.divf %308, %309 : vector<16x1xf32>
    %311 = vector.broadcast %310 : vector<16x1xf32> to vector<16x32xf32>
    %312 = arith.subf %302, %311 : vector<16x32xf32>
    %313 = arith.mulf %312, %312 : vector<16x32xf32>
    %cst_143 = arith.constant dense<0.000000e+00> : vector<16xf32>
    %314 = vector.multi_reduction <add>, %313, %cst_143 [1] : vector<16x32xf32> to vector<16xf32>
    %315 = vector.shape_cast %314 : vector<16xf32> to vector<16x1xf32>
    %cst_144 = arith.constant 3.200000e+01 : f32
    %316 = vector.broadcast %cst_144 : f32 to vector<16x1xf32>
    %317 = arith.divf %315, %316 : vector<16x1xf32>
    %318 = vector.broadcast %310 : vector<16x1xf32> to vector<16x32xf32>
    %319 = arith.subf %302, %318 : vector<16x32xf32>
    %cst_145 = arith.constant 9.99999996E-13 : f32
    %320 = vector.broadcast %cst_145 : f32 to vector<16x1xf32>
    %321 = arith.addf %317, %320 : vector<16x1xf32>
    %322 = math.rsqrt %321 : vector<16x1xf32>
    %323 = vector.broadcast %322 : vector<16x1xf32> to vector<16x32xf32>
    %324 = arith.mulf %319, %323 : vector<16x32xf32>
    %325 = vector.broadcast %304 : vector<1x32xf32> to vector<16x32xf32>
    %326 = arith.mulf %324, %325 : vector<16x32xf32>
    %327 = vector.broadcast %306 : vector<1x32xf32> to vector<16x32xf32>
    %328 = arith.addf %326, %327 : vector<16x32xf32>
    %c1_146 = arith.constant 1 : index
    %c0_147 = arith.constant 0 : index
    %c0_148 = arith.constant 0 : index
    %329 = vector.load %arg10[%c1_146, %c0_147, %c0_148] : memref<2x32x64xf32, #tpu.memory_space<vmem>>, vector<1x32x64xf32>
    %330 = vector.shape_cast %329 : vector<1x32x64xf32> to vector<32x64xf32>
    %cst_149 = arith.constant dense<0.000000e+00> : vector<16x64xf32>
    %331 = tpu.matmul %328, %330, %cst_149 {dimension_numbers = #tpu.dot_dimension_numbers<[1], [0], [0], [1], [0, 0, 1, 1], [], []>} : vector<16x32xf32>, vector<32x64xf32>, vector<16x64xf32> -> vector<16x64xf32>
    %c1_150 = arith.constant 1 : index
    %c0_151 = arith.constant 0 : index
    %c0_152 = arith.constant 0 : index
    %332 = vector.load %arg11[%c1_150, %c0_151, %c0_152] : memref<2x1x64xf32, #tpu.memory_space<vmem>>, vector<1x1x64xf32>
    %333 = vector.shape_cast %332 : vector<1x1x64xf32> to vector<1x64xf32>
    %334 = vector.broadcast %333 : vector<1x64xf32> to vector<16x64xf32>
    %335 = arith.addf %331, %334 : vector<16x64xf32>
    %cst_153 = arith.constant 5.000000e-01 : f32
    %336 = vector.broadcast %cst_153 : f32 to vector<16x64xf32>
    %337 = arith.mulf %336, %335 : vector<16x64xf32>
    %cst_154 = arith.constant 0.707106769 : f32
    %338 = vector.broadcast %cst_154 : f32 to vector<16x64xf32>
    %339 = arith.mulf %335, %338 : vector<16x64xf32>
    %340 = math.erf %339 : vector<16x64xf32>
    %cst_155 = arith.constant 1.000000e+00 : f32
    %341 = vector.broadcast %cst_155 : f32 to vector<16x64xf32>
    %342 = arith.addf %341, %340 : vector<16x64xf32>
    %343 = arith.mulf %337, %342 : vector<16x64xf32>
    %c1_156 = arith.constant 1 : index
    %c0_157 = arith.constant 0 : index
    %c0_158 = arith.constant 0 : index
    %344 = vector.load %arg12[%c1_156, %c0_157, %c0_158] : memref<2x64x32xf32, #tpu.memory_space<vmem>>, vector<1x64x32xf32>
    %345 = vector.shape_cast %344 : vector<1x64x32xf32> to vector<64x32xf32>
    %cst_159 = arith.constant dense<0.000000e+00> : vector<16x32xf32>
    %346 = tpu.matmul %343, %345, %cst_159 {dimension_numbers = #tpu.dot_dimension_numbers<[1], [0], [0], [1], [0, 0, 1, 1], [], []>} : vector<16x64xf32>, vector<64x32xf32>, vector<16x32xf32> -> vector<16x32xf32>
    %c1_160 = arith.constant 1 : index
    %c0_161 = arith.constant 0 : index
    %c0_162 = arith.constant 0 : index
    %347 = vector.load %arg13[%c1_160, %c0_161, %c0_162] : memref<2x1x32xf32, #tpu.memory_space<vmem>>, vector<1x1x32xf32>
    %348 = vector.shape_cast %347 : vector<1x1x32xf32> to vector<1x32xf32>
    %349 = vector.broadcast %348 : vector<1x32xf32> to vector<16x32xf32>
    %350 = arith.addf %346, %349 : vector<16x32xf32>
    %351 = arith.addf %350, %328 : vector<16x32xf32>
    %c1_163 = arith.constant 1 : index
    %c0_164 = arith.constant 0 : index
    %c0_165 = arith.constant 0 : index
    %352 = vector.load %arg14[%c1_163, %c0_164, %c0_165] : memref<2x1x32xf32, #tpu.memory_space<vmem>>, vector<1x1x32xf32>
    %353 = vector.shape_cast %352 : vector<1x1x32xf32> to vector<1x32xf32>
    %c1_166 = arith.constant 1 : index
    %c0_167 = arith.constant 0 : index
    %c0_168 = arith.constant 0 : index
    %354 = vector.load %arg15[%c1_166, %c0_167, %c0_168] : memref<2x1x32xf32, #tpu.memory_space<vmem>>, vector<1x1x32xf32>
    %355 = vector.shape_cast %354 : vector<1x1x32xf32> to vector<1x32xf32>
    %cst_169 = arith.constant dense<0.000000e+00> : vector<16xf32>
    %356 = vector.multi_reduction <add>, %351, %cst_169 [1] : vector<16x32xf32> to vector<16xf32>
    %357 = vector.shape_cast %356 : vector<16xf32> to vector<16x1xf32>
    %cst_170 = arith.constant 3.200000e+01 : f32
    %358 = vector.broadcast %cst_170 : f32 to vector<16x1xf32>
    %359 = arith.divf %357, %358 : vector<16x1xf32>
    %360 = vector.broadcast %359 : vector<16x1xf32> to vector<16x32xf32>
    %361 = arith.subf %351, %360 : vector<16x32xf32>
    %362 = arith.mulf %361, %361 : vector<16x32xf32>
    %cst_171 = arith.constant dense<0.000000e+00> : vector<16xf32>
    %363 = vector.multi_reduction <add>, %362, %cst_171 [1] : vector<16x32xf32> to vector<16xf32>
    %364 = vector.shape_cast %363 : vector<16xf32> to vector<16x1xf32>
    %cst_172 = arith.constant 3.200000e+01 : f32
    %365 = vector.broadcast %cst_172 : f32 to vector<16x1xf32>
    %366 = arith.divf %364, %365 : vector<16x1xf32>
    %367 = vector.broadcast %359 : vector<16x1xf32> to vector<16x32xf32>
    %368 = arith.subf %351, %367 : vector<16x32xf32>
    %cst_173 = arith.constant 9.99999996E-13 : f32
    %369 = vector.broadcast %cst_173 : f32 to vector<16x1xf32>
    %370 = arith.addf %366, %369 : vector<16x1xf32>
    %371 = math.rsqrt %370 : vector<16x1xf32>
    %372 = vector.broadcast %371 : vector<16x1xf32> to vector<16x32xf32>
    %373 = arith.mulf %368, %372 : vector<16x32xf32>
    %374 = vector.broadcast %353 : vector<1x32xf32> to vector<16x32xf32>
    %375 = arith.mulf %373, %374 : vector<16x32xf32>
    %376 = vector.broadcast %355 : vector<1x32xf32> to vector<16x32xf32>
    %377 = arith.addf %375, %376 : vector<16x32xf32>
    %c0_174 = arith.constant 0 : index
    %c0_175 = arith.constant 0 : index
    %378 = vector.load %arg16[%c0_174, %c0_175] : memref<32x32xf32, #tpu.memory_space<vmem>>, vector<32x32xf32>
    %cst_176 = arith.constant dense<0.000000e+00> : vector<16x32xf32>
    %379 = tpu.matmul %377, %378, %cst_176 {dimension_numbers = #tpu.dot_dimension_numbers<[1], [0], [0], [1], [0, 0, 1, 1], [], []>} : vector<16x32xf32>, vector<32x32xf32>, vector<16x32xf32> -> vector<16x32xf32>
    %c0_177 = arith.constant 0 : index
    %c0_178 = arith.constant 0 : index
    %380 = vector.load %arg17[%c0_177, %c0_178] : memref<1x32xf32, #tpu.memory_space<vmem>>, vector<1x32xf32>
    %381 = vector.broadcast %380 : vector<1x32xf32> to vector<16x32xf32>
    %382 = arith.addf %379, %381 : vector<16x32xf32>
    %383 = math.tanh %382 : vector<16x32xf32>
    %c0_179 = arith.constant 0 : index
    %c0_180 = arith.constant 0 : index
    %384 = vector.load %arg18[%c0_179, %c0_180] : memref<32x128xf32, #tpu.memory_space<vmem>>, vector<32x128xf32>
    %cst_181 = arith.constant dense<0.000000e+00> : vector<16x128xf32>
    %385 = tpu.matmul %383, %384, %cst_181 {dimension_numbers = #tpu.dot_dimension_numbers<[1], [0], [0], [1], [0, 0, 1, 1], [], []>} : vector<16x32xf32>, vector<32x128xf32>, vector<16x128xf32> -> vector<16x128xf32>
    %c0_182 = arith.constant 0 : index
    %c0_183 = arith.constant 0 : index
    %386 = vector.load %arg19[%c0_182, %c0_183] : memref<1x128xf32, #tpu.memory_space<vmem>>, vector<1x128xf32>
    %387 = vector.broadcast %386 : vector<1x128xf32> to vector<16x128xf32>
    %388 = arith.addf %385, %387 : vector<16x128xf32>
    %cst_184 = arith.constant 0.000000e+00 : f32
    %389 = vector.broadcast %cst_184 : f32 to vector<16x128xf32>
    %390 = arith.maximumf %388, %389 : vector<16x128xf32>
    %c0_185 = arith.constant 0 : index
    %c0_186 = arith.constant 0 : index
    %391 = vector.load %arg20[%c0_185, %c0_186] : memref<1x128xf32, #tpu.memory_space<vmem>>, vector<1x128xf32>
    %392 = vector.broadcast %391 : vector<1x128xf32> to vector<16x128xf32>
    %393 = arith.mulf %390, %392 : vector<16x128xf32>
    %cst_187 = arith.constant dense<0.000000e+00> : vector<16xf32>
    %394 = vector.multi_reduction <add>, %393, %cst_187 [1] : vector<16x128xf32> to vector<16xf32>
    %395 = vector.shape_cast %394 : vector<16xf32> to vector<16x1xf32>
    %c0_188 = arith.constant 0 : index
    %c0_189 = arith.constant 0 : index
    %396 = vector.load %arg21[%c0_188, %c0_189] : memref<1x1xf32, #tpu.memory_space<vmem>>, vector<1x1xf32>
    %397 = vector.broadcast %396 : vector<1x1xf32> to vector<16x1xf32>
    %398 = arith.addf %395, %397 : vector<16x1xf32>
    %cst_190 = arith.constant 0.000000e+00 : f32
    %399 = vector.broadcast %cst_190 : f32 to vector<16x1xf32>
    %400 = arith.subf %399, %398 : vector<16x1xf32>
    %401 = math.exp %400 : vector<16x1xf32>
    %cst_191 = arith.constant 1.000000e+00 : f32
    %402 = vector.broadcast %cst_191 : f32 to vector<16x1xf32>
    %403 = arith.addf %402, %401 : vector<16x1xf32>
    %cst_192 = arith.constant 1.000000e+00 : f32
    %404 = vector.broadcast %cst_192 : f32 to vector<16x1xf32>
    %405 = arith.divf %404, %403 : vector<16x1xf32>
    %406 = vector.extract_strided_slice %405 {offsets = [0, 0], sizes = [1, 1], strides = [1, 1]} : vector<16x1xf32> to vector<1x1xf32>
    %c0_193 = arith.constant 0 : index
    %c0_194 = arith.constant 0 : index
    %407 = vector.load %arg22[%c0_193, %c0_194] : memref<2x1xf32, #tpu.memory_space<vmem>>, vector<1x1xf32>
    tpu.vector_store %arg22[%c0_193, %c0_194], %406 {strides = array<i32>} : memref<2x1xf32, #tpu.memory_space<vmem>>, vector<1x1xf32>,
    %408 = vector.extract_strided_slice %405 {offsets = [8, 0], sizes = [1, 1], strides = [1, 1]} : vector<16x1xf32> to vector<1x1xf32>
    %c1_195 = arith.constant 1 : index
    %c0_196 = arith.constant 0 : index
    %409 = vector.load %arg22[%c1_195, %c0_196] : memref<2x1xf32, #tpu.memory_space<vmem>>, vector<1x1xf32>
    tpu.vector_store %arg22[%c1_195, %c0_196], %408 {strides = array<i32>} : memref<2x1xf32, #tpu.memory_space<vmem>>, vector<1x1xf32>,
    return
  }
}

</mosaic_0001>

<bundles_post_ra>
// kernel: bert_binery_forward.1
= control target key start
LH: loop header
LB: loop body
LE: loop exit
PB: predicated region body
PF: predicated region fallthrough
CT: control target
= control target key end

     0   :  { %vm77_vm0 = vcmask 261120   ;;  %v1748_v4 = vmov 32.0   ;;  %s1749_s24 = smov 112   ;;  %s2346_s25 = smov 48   ;;  %vm180_vm8 = vcmask 130048   ;;  %vm208_vm9 = vcmask 64512   ;;  %s2317_s0 = inlined_call_operand.vmem [shape: f32[16,32], index: 0, kind: input, shape index: {}]   ;;  %s2318_s2 = inlined_call_operand.vmem [shape: f32[1,32], index: 2, kind: input, shape index: {}]   ;;  %s2319_s3 = inlined_call_operand.vmem [shape: f32[1,32], index: 3, kind: input, shape index: {}]   ;;  %s2320_s5 = inlined_call_operand.vmem [shape: f32[2,1,96], index: 5, kind: input, shape index: {}]   ;;  %s2321_s4 = inlined_call_operand.vmem [shape: f32[2,32,96], index: 4, kind: input, shape index: {}]   ;;  %s2322_s1 = inlined_call_operand.vmem [shape: f32[2,8], index: 1, kind: input, shape index: {}]   ;;  %s2323_s6 = inlined_call_operand.vmem [shape: f32[2,32,32], index: 6, kind: input, shape index: {}]   ;;  %s2324_s7 = inlined_call_operand.vmem [shape: f32[2,1,32], index: 7, kind: input, shape index: {}]   ;;  %s2325_s8 = inlined_call_operand.vmem [shape: f32[2,1,32], index: 8, kind: input, shape index: {}]   ;;  %s2326_s9 = inlined_call_operand.vmem [shape: f32[2,1,32], index: 9, kind: input, shape index: {}]   ;;  %s2327_s10 = inlined_call_operand.vmem [shape: f32[2,32,64], index: 10, kind: input, shape index: {}]   ;;  %s2328_s11 = inlined_call_operand.vmem [shape: f32[2,1,64], index: 11, kind: input, shape index: {}]   ;;  %s2329_s12 = inlined_call_operand.vmem [shape: f32[2,64,32], index: 12, kind: input, shape index: {}]   ;;  %s2330_s13 = inlined_call_operand.vmem [shape: f32[2,1,32], index: 13, kind: input, shape index: {}]   ;;  %s2331_s14 = inlined_call_operand.vmem [shape: f32[2,1,32], index: 14, kind: input, shape index: {}]   ;;  %s2332_s15 = inlined_call_operand.vmem [shape: f32[2,1,32], index: 15, kind: input, shape index: {}]   ;;  %s2333_s17 = inlined_call_operand.vmem [shape: f32[1,32], index: 17, kind: input, shape index: {}]   ;;  %s2334_s16 = inlined_call_operand.vmem [shape: f32[32,32], index: 16, kind: input, shape index: {}]   ;;  %s2335_s19 = inlined_call_operand.vmem [shape: f32[1,128], index: 19, kind: input, shape index: {}]   ;;  %s2336_s18 = inlined_call_operand.vmem [shape: f32[32,128], index: 18, kind: input, shape index: {}]   ;;  %s2337_s20 = inlined_call_operand.vmem [shape: f32[1,128], index: 20, kind: input, shape index: {}]   ;;  %s2338_s21 = inlined_call_operand.<no memory space> [shape: f32[1,1], index: 21, kind: input, shape index: {}]   ;;  %s2339_s22 = inlined_call_operand.vmem [shape: f32[2,1], index: 22, kind: output, shape index: {}]  }
   0x1   :  { %2348 = sst [smem:[#allocation4_spill]] %s2317_s0  ;;  %1674 = vrcp.f32 %v1748_v4  ;;  %s1752_s26 = smov 80   ;;  %vm318_vm10 = vcmask 261248  }
   0x2   :  { %2349 = sst [smem:[#allocation5_spill]] %s2318_s2 }
   0x3   :  { %2350 = sst [smem:[#allocation6_spill]] %s2319_s3 }
   0x4   :  { %2351 = sst [smem:[#allocation7_spill]] %s2320_s5 }
   0x5   :  { %2352 = sst [smem:[#allocation8_spill]] %s2321_s4 }
   0x6   :  { %2353 = sst [smem:[#allocation9_spill]] %s2322_s1 }
   0x7   :  { %2354 = sst [smem:[#allocation10_spill]] %s2323_s6  ;;  %v1675_v5 = vpop.eup %1674  ;;  %s1750_s6 = smov 96  }
   0x8   :  { %s2355_s29 = sld [smem:[#allocation4_spill]]  ;;  %v85_v6 = vmul.f32 32.0, %v1675_v5  ;;  %vm89_vm1 = vweird.f32 %v1675_v5 }
   0x9   :  { %s2356_s23 = sld [smem:[#allocation8_spill]] }
   0xa   :  { %v86_v7 = vsub.f32 1.0, %v85_v6  ;;  %s2357_s28 = sld [smem:[#allocation5_spill]] }
   0xb   :  { %s2358_s4 = sld [smem:[#allocation6_spill]] }
   0xc   :  { %v87_v8 = vmul.f32 %v1675_v5, %v86_v7  ;;  %s2359_s2 = sld [smem:[#allocation7_spill]] }
   0xd   :  { %s2360_s5 = sld [smem:[#allocation9_spill]] }
   0xe   :  { %v73_v0 = vld [vmem:[%s2355_s29] sm:$0xff]  ;;  %v74_v1 = vld [vmem:[%s2355_s29 + $0x8] sm:$0xff]  ;;  %v88_v9 = vadd.f32 %v1675_v5, %v87_v8  ;;  %s2344_s29 = smov 16   ;;  %s2361_s0 = sld [smem:[#allocation10_spill]] }
   0xf   :  { %v78_v2 = vsel %vm77_vm0, %v73_v0, 0.0  ;;  %v81_v3 = vsel %vm77_vm0, %v74_v1, 0.0  ;;  %v143_v21 = vld [vmem:[%s2356_s23 + $0x18] sm:$0xff]  ;;  %v142_v22 = vld [vmem:[%s2356_s23 + $0x10] sm:$0xff]  ;;  %v141_v23 = vld [vmem:[%s2356_s23 + $0x8] sm:$0xff] }
  0x10   :  { %79 = vadd.xlane.f32.xlu0 %v78_v2  ;;  %82 = vadd.xlane.f32.xlu1 %v81_v3  ;;  %v1878_v10 = vsel %vm89_vm1, %v1675_v5, %v88_v9  ;;  %v140_v24 = vld [vmem:[%s2356_s23] sm:$0xff] }
  0x11   :  { %166 = vmatpush.msra.mxu0 %v143_v21  ;;  %v1652_v43 = vld [vmem:[%s2357_s28] ss:$0 sm:$0xff]  ;;  %s1753_s28 = smov 64  }
  0x12   :  { %v1653_v47 = vld [vmem:[%s2358_s4] ss:$0 sm:$0xff] }
  0x13   :  { %167 = vmatpush.msra.mxu0 %v142_v22  ;;  %v1654_v53 = vld [vmem:[%s2359_s2] ss:$0 sm:$0xff] }
  0x15   :  { %168 = vmatpush.msra.mxu0 %v141_v23 }
  0x17   :  { %169 = vmatpush.msra.mxu0 %v140_v24 }
  0x83   :  { %v80_v11 = vpop.xlane.xlu0 %79  ;;  %v83_v12 = vpop.xlane.xlu1 %82 }
  0x84   :  { %v91_v13 = vmul.f32 %v1878_v10, %v80_v11  ;;  %v92_v14 = vmul.f32 %v1878_v10, %v83_v12 }
  0x86   :  { %v93_v15 = vsub.f32 %v73_v0, %v91_v13  ;;  %v94_v16 = vsub.f32 %v74_v1, %v92_v14  ;;  %v139_v0 = vld [vmem:[%s2360_s5] sm:$0x3] }
  0x87   :  { %v1935_v1 = vperm.slane %v139_v0, 0  ;;  %v1944_v11 = vperm.slane %v139_v0, 1 }
  0x88   :  { %v95_v17 = vmul.f32 %v93_v15, %v93_v15  ;;  %v96_v18 = vmul.f32 %v94_v16, %v94_v16 }
  0x8a   :  { %v97_v19 = vsel %vm77_vm0, %v95_v17, 0.0  ;;  %v100_v20 = vsel %vm77_vm0, %v96_v18, 0.0 }
  0x8b   :  { %98 = vadd.xlane.f32.xlu0 %v97_v19  ;;  %101 = vadd.xlane.f32.xlu1 %v100_v20 }
  0xfe   :  { %v99_v25 = vpop.xlane.xlu0 %98  ;;  %v102_v26 = vpop.xlane.xlu1 %101 }
  0xff   :  { %v103_v27 = vmul.f32 %v99_v25, %v1878_v10  ;;  %v104_v28 = vmul.f32 %v102_v26, %v1878_v10 }
 0x101   :  { %v105_v29 = vadd.f32 1e-12, %v103_v27  ;;  %v106_v30 = vadd.f32 1e-12, %v104_v28 }
 0x103   :  { %1676 = vrsqrt.f32 %v105_v29  ;;  %vm123_vm2 = vweird.f32 %v106_v30  ;;  %vm113_vm5 = vweird.f32 %v105_v29 }
 0x104   :  { %1678 = vrsqrt.f32 %v106_v30 }
 0x109   :  { %v1677_v31 = vpop.eup %1676 }
 0x10a   :  { %v1679_v32 = vpop.eup %1678  ;;  %v108_v33 = vmul.f32 %v1677_v31, %v105_v29  ;;  %vm114_vm4 = vweird.f32 %v1677_v31 }
 0x10b   :  { %v118_v34 = vmul.f32 %v1679_v32, %v106_v30  ;;  %vm124_vm3 = vweird.f32 %v1679_v32  ;;  %vm115_vm7 = vmor %vm113_vm5, %vm114_vm4 }
 0x10c   :  { %v109_v35 = vmul.f32 %v1677_v31, %v108_v33  ;;  %vm125_vm6 = vmor %vm123_vm2, %vm124_vm3 }
 0x10d   :  { %v119_v36 = vmul.f32 %v1679_v32, %v118_v34 }
 0x10e   :  { %v110_v37 = vmul.f32 0.5, %v109_v35 }
 0x10f   :  { %v120_v38 = vmul.f32 0.5, %v119_v36 }
 0x110   :  { %v111_v39 = vsub.f32 1.5, %v110_v37 }
 0x111   :  { %v121_v40 = vsub.f32 1.5, %v120_v38 }
 0x112   :  { %v112_v41 = vmul.f32 %v1677_v31, %v111_v39 }
 0x113   :  { %v122_v42 = vmul.f32 %v1679_v32, %v121_v40 }
 0x114   :  { %v116_v44 = vsel %vm115_vm7, %v1677_v31, %v112_v41 }
 0x115   :  { %v126_v45 = vsel %vm125_vm6, %v1679_v32, %v122_v42  ;;  %v127_v46 = vmul.f32 %v116_v44, %v93_v15  ;;  %vm694_vm6 = vcmask 523264  }
 0x116   :  { %v128_v49 = vmul.f32 %v126_v45, %v94_v16 }
 0x117   :  { %v132_v48 = vmul.f32 %v1652_v43, %v127_v46 }
 0x118   :  { %v133_v51 = vmul.f32 %v1652_v43, %v128_v49 }
 0x119   :  { %v1904_v50 = vadd.f32 %v1653_v47, %v132_v48 }
 0x11a   :  { %v1908_v52 = vadd.f32 %v1653_v47, %v133_v51 }
 0x11b   :  { %1569 = vmatmul.msk.f32.vlgmr.msra.gmra.mxu0 %vm77_vm0, %v1904_v50 }
 0x123   :  { %1570 = vmatmul.msk.f32.gmra.mxu0 %vm77_vm0, %v1908_v52 }
 0x198   :  { %v171_v54 = vpop.f32.mrf.mxu0 }
 0x199   :  { %v172_v55 = vadd.f32 %v1654_v53, %v171_v54  ;;  %v464_v54 = vld [vmem:[%s2361_s0 + $0x10] sm:$0xff] }
 0x19b   :  { %247 = vrot.lane.b32.xlu0 %v172_v55, %s1749_s24  ;;  %178 = vrot.lane.b32.xlu2 %v172_v55, %s1750_s6 }
 0x1a0   :  { %v174_v56 = vpop.f32.mrf.mxu0 }
 0x1a1   :  { %v1919_v57 = vadd.f32 %v1654_v53, %v174_v56  ;;  %v465_v53 = vld [vmem:[%s2361_s0 + $0x18] sm:$0xff] }
 0x1a3   :  { %286 = vrot.lane.b32.xlu0 %v172_v55, %s2346_s25  ;;  %249 = vrot.lane.b32.xlu2 %v172_v55, %s1752_s26 }
 0x1ab   :  { %390 = vrot.lane.b32.xlu0 %v1919_v57, %s1752_s26 }
 0x1b3   :  { %321 = vrot.lane.b32.xlu0 %v1919_v57, %s1750_s6 }
 0x1f5   :  { %v179_v58 = vpop.permute.xlu2 %178 }
 0x1f6   :  { %1571 = vmatpush.xpose.msk.msrb.mxu0 %vm180_vm8, %v179_v58  ;;  %v462_v58 = vld [vmem:[%s2361_s0] sm:$0xff] }
 0x1f9   :  { %1572 = vmatmul.msk.f32.vlgmr.msrb.gmra.mxu0 %vm180_vm8, %v172_v55 }
 0x1fd   :  { %v250_v59 = vpop.permute.xlu2 %249 }
 0x1fe   :  { %1574 = vmatpush.xpose.msk.msra.mxu3 %vm180_vm8, %v250_v59 }
 0x20d   :  { %v248_v60 = vpop.permute.xlu0 %247 }
 0x20e   :  { %1575 = vmatmul.msk.f32.vlgmr.msra.gmra.mxu3 %vm180_vm8, %v248_v60 }
 0x215   :  { %v287_v61 = vpop.permute.xlu0 %286 }
 0x21d   :  { %v391_v62 = vpop.permute.xlu0 %390 }
 0x225   :  { %v322_v63 = vpop.permute.xlu0 %321 }
 0x226   :  { %1577 = vmatpush.xpose.msk.msra.mxu1 %vm180_vm8, %v322_v63 }
 0x229   :  { %1578 = vmatmul.msk.f32.vlgmr.msra.gmra.mxu1 %vm180_vm8, %v1919_v57 }
 0x276   :  { %v202_v2 = vpop.f32.mrf.mxu0 }
 0x277   :  { %v205_v3 = vmul.f32 0.25, %v202_v2 }
 0x279   :  { %v207_v4 = vadd.f32 %v1935_v1, %v205_v3 }
 0x27b   :  { %v209_v5 = vsel %vm208_vm9, %v207_v4, -inf }
 0x27c   :  { %210 = vmax.xlane.f32.xlu1 %v209_v5  ;;  %v1655_v5 = vld [vmem:[%s2324_s7] ss:$0 sm:$0xff] }
 0x291   :  { %v272_v6 = vpop.f32.mrf.mxu3 }
 0x292   :  { %v275_v7 = vmul.f32 0.25, %v272_v6 }
 0x294   :  { %v276_v8 = vadd.f32 %v275_v7, %v1935_v1 }
 0x295   :  { %218 = vrot.lane.b32.xlu1 %v172_v55, %s1753_s28 }
 0x296   :  { %v277_v9 = vsel %vm208_vm9, %v276_v8, -inf }
 0x297   :  { %278 = vmax.xlane.f32.xlu2 %v277_v9 }
 0x29d   :  { %388 = vrot.lane.b32.xlu1 %v1919_v57, %s1749_s24 }
 0x2a6   :  { %v344_v12 = vpop.f32.mrf.mxu1 }
 0x2a7   :  { %v347_v13 = vmul.f32 0.25, %v344_v12 }
 0x2a9   :  { %v349_v14 = vadd.f32 %v1944_v11, %v347_v13 }
 0x2ab   :  { %v350_v15 = vsel %vm208_vm9, %v349_v14, -inf }
 0x2ac   :  { %351 = vmax.xlane.f32.xlu0 %v350_v15 }
 0x2ef   :  { %v211_v16 = vpop.xlane.xlu1 %210 }
 0x2f0   :  { %v212_v17 = vsub.f32 %v207_v4, %v211_v16 }
 0x2f2   :  { %v213_v18 = vmul.f32 1.442695, %v212_v17 }
 0x2f4   :  { %1680 = vpow2.f32 %v213_v18 }
 0x2fa   :  { %v1681_v19 = vpop.eup %1680 }
 0x2fb   :  { %v215_v20 = vsel %vm208_vm9, %v1681_v19, 0.0 }
 0x2fc   :  { %216 = vadd.xlane.f32.xlu2 %v215_v20  ;;  %v558_v20 = vld [vmem:[%s2327_s10 + $0x8] sm:$0xff] }
 0x307   :  { %v219_v21 = vpop.permute.xlu1 %218 }
 0x308   :  { %239 = vmatpush.msra.mxu2 %v219_v21  ;;  %v557_v21 = vld [vmem:[%s2327_s10] sm:$0xff] }
 0x309   :  { %1573 = vmatmul.msk.f32.vlgmr.msra.gmra.mxu2 %vm208_vm9, %v1681_v19  ;;  %v559_v19 = vld [vmem:[%s2327_s10 + $0x10] sm:$0xff] }
 0x30a   :  { %307 = vmatpush.msrb.mxu2 %v287_v61  ;;  %v279_v22 = vpop.xlane.xlu2 %278 }
 0x30b   :  { %v280_v23 = vsub.f32 %v276_v8, %v279_v22 }
 0x30c   :  { %1580 = vmatpush.xpose.msk.msra.mxu2 %vm180_vm8, %v391_v62 }
 0x30d   :  { %v281_v24 = vmul.f32 1.442695, %v280_v23 }
 0x30f   :  { %1682 = vpow2.f32 %v281_v24  ;;  %v389_v27 = vpop.permute.xlu1 %388 }
 0x314   :  { %427 = vrot.lane.b32.xlu2 %v1919_v57, %s2346_s25 }
 0x315   :  { %v1683_v25 = vpop.eup %1682 }
 0x316   :  { %1576 = vmatmul.msk.f32.vlgmr.msrb.gmra.mxu2 %vm208_vm9, %v1683_v25  ;;  %v283_v26 = vsel %vm208_vm9, %v1683_v25, 0.0 }
 0x317   :  { %284 = vadd.xlane.f32.xlu1 %v283_v26 }
 0x31e   :  { %1581 = vmatmul.msk.f32.vlgmr.msra.gmra.mxu2 %vm180_vm8, %v389_v27 }
 0x31f   :  { %v352_v41 = vpop.xlane.xlu0 %351 }
 0x320   :  { %v353_v42 = vsub.f32 %v349_v14, %v352_v41 }
 0x322   :  { %v354_v43 = vmul.f32 1.442695, %v353_v42 }
 0x36f   :  { %v217_v28 = vpop.xlane.xlu2 %216 }
 0x370   :  { %1684 = vrcp.f32 %v217_v28 }
 0x376   :  { %v1685_v30 = vpop.eup %1684 }
 0x377   :  { %v428_v29 = vpop.permute.xlu2 %427 }
 0x378   :  { %448 = vmatpush.msrb.mxu1 %v428_v29 }
 0x38a   :  { %v285_v33 = vpop.xlane.xlu1 %284 }
 0x38b   :  { %1686 = vrcp.f32 %v285_v33 }
 0x38c   :  { %v241_v31 = vpop.f32.mrf.mxu2  ;;  %1688 = vpow2.f32 %v354_v43 }
 0x38d   :  { %v245_v32 = vmul.f32 %v1685_v30, %v241_v31 }
 0x38f   :  { %246 = vst.msk [vmem:[#allocation2] sm:$0xff] %vm180_vm8, %v245_v32 }
 0x391   :  { %v1687_v34 = vpop.eup %1686 }
 0x392   :  { %v1689_v44 = vpop.eup %1688 }
 0x393   :  { %v356_v45 = vsel %vm208_vm9, %v1689_v44, 0.0 }
 0x399   :  { %v309_v35 = vpop.f32.mrf.mxu2 }
 0x39a   :  { %v313_v36 = vmul.f32 %v1687_v34, %v309_v35  ;;  %v2009_v35 = vld [vmem:[%s2325_s8] ss:$0 sm:$0xff] }
 0x39c   :  { %315 = vrot.lane.b32.xlu1 %v313_v36, %s2344_s29 }
 0x3a1   :  { %v413_v37 = vpop.f32.mrf.mxu2 }
 0x3a2   :  { %v416_v38 = vmul.f32 0.25, %v413_v37  ;;  %v2014_v37 = vld [vmem:[%s2326_s9] ss:$0 sm:$0xff] }
 0x3a4   :  { %v417_v39 = vadd.f32 %v416_v38, %v1944_v11 }
 0x3a6   :  { %v418_v40 = vsel %vm208_vm9, %v417_v39, -inf }
 0x3a7   :  { %419 = vmax.xlane.f32.xlu2 %v418_v40 }
 0x3bf   :  { %359 = vrot.lane.b32.xlu2 %v1919_v57, %s1753_s28  ;;  %v463_v57 = vld [vmem:[%s2361_s0 + $0x8] sm:$0xff] }
 0x3e8   :  { %357 = vadd.xlane.f32.xlu2 %v356_v45  ;;  %v2031_v45 = vld [vmem:[%s2328_s11] ss:$0 sm:$0xff] }
 0x40e   :  { %v316_v46 = vpop.permute.xlu1 %315 }
 0x40f   :  { %319 = vst.msk [vmem:[#allocation2] sm:$0xff] %vm318_vm10, %v316_v46 }
 0x416   :  { %v460_v59 = vld [vmem:[#allocation2] sm:$0xff] }
 0x41a   :  { %v420_v47 = vpop.xlane.xlu2 %419 }
 0x41b   :  { %v421_v48 = vsub.f32 %v417_v39, %v420_v47 }
 0x41d   :  { %v422_v49 = vmul.f32 1.442695, %v421_v48 }
 0x41f   :  { %1690 = vpow2.f32 %v422_v49 }
 0x422   :  { %v360_v51 = vpop.permute.xlu2 %359 }
 0x423   :  { %380 = vmatpush.msrb.mxu3 %v360_v51 }
 0x424   :  { %1579 = vmatmul.msk.f32.vlgmr.msrb.gmra.mxu3 %vm208_vm9, %v1689_v44 }
 0x425   :  { %v1691_v55 = vpop.eup %1690  ;;  %488 = vmatpush.msra.mxu3 %v465_v53 }
 0x426   :  { %1582 = vmatmul.msk.f32.vlgmr.msrb.gmra.mxu1 %vm208_vm9, %v1691_v55  ;;  %v424_v56 = vsel %vm208_vm9, %v1691_v55, 0.0 }
 0x427   :  { %425 = vadd.xlane.f32.xlu0 %v424_v56  ;;  %489 = vmatpush.msra.mxu3 %v464_v54 }
 0x429   :  { %490 = vmatpush.msra.mxu3 %v463_v57 }
 0x42b   :  { %491 = vmatpush.msra.mxu3 %v462_v58 }
 0x42c   :  { %1583 = vmatmul.msk.f32.vlgmr.msra.gmra.mxu3 %vm77_vm0, %v460_v59 }
 0x45b   :  { %v358_v61 = vpop.xlane.xlu2 %357 }
 0x49a   :  { %v426_v60 = vpop.xlane.xlu0 %425 }
 0x49b   :  { %1692 = vrcp.f32 %v426_v60 }
 0x49c   :  { %1694 = vrcp.f32 %v358_v61 }
 0x4a1   :  { %v1693_v62 = vpop.eup %1692 }
 0x4a2   :  { %v1695_v2 = vpop.eup %1694 }
 0x4a3   :  { %v450_v63 = vpop.f32.mrf.mxu1 }
 0x4a4   :  { %v454_v0 = vmul.f32 %v1693_v62, %v450_v63 }
 0x4a6   :  { %456 = vrot.lane.b32.xlu0 %v454_v0, %s2344_s29 }
 0x4a7   :  { %v382_v3 = vpop.f32.mrf.mxu3 }
 0x4a8   :  { %v386_v4 = vmul.f32 %v1695_v2, %v382_v3  ;;  %v689_v3 = vld [vmem:[%s2329_s12 + $0x38] sm:$0xff] }
 0x4aa   :  { %387 = vst.msk [vmem:[#allocation2 + $0x8] sm:$0xff] %vm180_vm8, %v386_v4  ;;  %v688_v4 = vld [vmem:[%s2329_s12 + $0x30] sm:$0xff] }
 0x4af   :  { %v493_v6 = vpop.f32.mrf.mxu3 }
 0x4b0   :  { %v494_v7 = vadd.f32 %v1655_v5, %v493_v6 }
 0x4b2   :  { %v499_v8 = vadd.f32 %v494_v7, %v1904_v50  ;;  %v560_v50 = vld [vmem:[%s2327_s10 + $0x18] sm:$0xff]  ;;  %v686_v7 = vld [vmem:[%s2329_s12 + $0x20] sm:$0xff] }
 0x4b3   :  { %583 = vmatpush.msrb.mxu2 %v560_v50  ;;  %v682_v50 = vld [vmem:[%s2329_s12] sm:$0xff] }
 0x4b4   :  { %v503_v9 = vsel %vm77_vm0, %v499_v8, 0.0 }
 0x4b5   :  { %504 = vadd.xlane.f32.xlu1 %v503_v9  ;;  %584 = vmatpush.msrb.mxu2 %v559_v19  ;;  %v685_v9 = vld [vmem:[%s2329_s12 + $0x18] sm:$0xff] }
 0x4b7   :  { %585 = vmatpush.msrb.mxu2 %v558_v20 }
 0x4b9   :  { %586 = vmatpush.msrb.mxu2 %v557_v21 }
 0x4bb   :  { %709 = vmatpush.msra.mxu2 %v689_v3 }
 0x4bd   :  { %710 = vmatpush.msra.mxu2 %v688_v4 }
 0x518   :  { %v457_v12 = vpop.permute.xlu0 %456 }
 0x519   :  { %459 = vst.msk [vmem:[#allocation2 + $0x8] sm:$0xff] %vm318_vm10, %v457_v12 }
 0x520   :  { %v461_v13 = vld [vmem:[#allocation2 + $0x8] sm:$0xff] }
 0x521   :  { %1584 = vmatmul.msk.f32.gmra.mxu3 %vm77_vm0, %v461_v13  ;;  %v684_v13 = vld [vmem:[%s2329_s12 + $0x10] sm:$0xff] }
 0x528   :  { %v505_v14 = vpop.xlane.xlu1 %504 }
 0x529   :  { %v509_v15 = vmul.f32 %v505_v14, %v1878_v10 }
 0x52b   :  { %v511_v16 = vsub.f32 %v499_v8, %v509_v15  ;;  %v683_v15 = vld [vmem:[%s2329_s12 + $0x8] sm:$0xff] }
 0x52d   :  { %v513_v17 = vmul.f32 %v511_v16, %v511_v16 }
 0x52f   :  { %v515_v18 = vsel %vm77_vm0, %v513_v17, 0.0 }
 0x530   :  { %516 = vadd.xlane.f32.xlu0 %v515_v18 }
 0x5a3   :  { %v517_v22 = vpop.xlane.xlu0 %516 }
 0x5a4   :  { %v521_v23 = vmul.f32 %v517_v22, %v1878_v10  ;;  %v496_v24 = vpop.f32.mrf.mxu3 }
 0x5a5   :  { %v497_v25 = vadd.f32 %v1655_v5, %v496_v24  ;;  %v687_v5 = vld [vmem:[%s2329_s12 + $0x28] sm:$0xff] }
 0x5a6   :  { %v523_v26 = vadd.f32 1e-12, %v521_v23  ;;  %711 = vmatpush.msra.mxu2 %v687_v5 }
 0x5a7   :  { %v500_v27 = vadd.f32 %v497_v25, %v1908_v52 }
 0x5a8   :  { %1696 = vrsqrt.f32 %v523_v26  ;;  %vm531_vm12 = vweird.f32 %v523_v26  ;;  %712 = vmatpush.msra.mxu2 %v686_v7 }
 0x5a9   :  { %v506_v28 = vsel %vm77_vm0, %v500_v27, 0.0 }
 0x5aa   :  { %507 = vadd.xlane.f32.xlu2 %v506_v28  ;;  %713 = vmatpush.msra.mxu2 %v685_v9 }
 0x5ac   :  { %714 = vmatpush.msra.mxu2 %v684_v13 }
 0x5ae   :  { %v1697_v29 = vpop.eup %1696  ;;  %715 = vmatpush.msra.mxu2 %v683_v15 }
 0x5af   :  { %v526_v30 = vmul.f32 %v1697_v29, %v523_v26  ;;  %vm532_vm11 = vweird.f32 %v1697_v29 }
 0x5b0   :  { %vm533_vm13 = vmor %vm531_vm12, %vm532_vm11  ;;  %716 = vmatpush.msra.mxu2 %v682_v50 }
 0x5b1   :  { %v527_v31 = vmul.f32 %v1697_v29, %v526_v30 }
 0x5b3   :  { %v528_v32 = vmul.f32 0.5, %v527_v31 }
 0x5b5   :  { %v529_v33 = vsub.f32 1.5, %v528_v32 }
 0x5b7   :  { %v530_v34 = vmul.f32 %v1697_v29, %v529_v33 }
 0x5b9   :  { %v534_v36 = vsel %vm533_vm13, %v1697_v29, %v530_v34 }
 0x5ba   :  { %v545_v52 = vmul.f32 %v534_v36, %v511_v16 }
 0x5bc   :  { %v550_v38 = vmul.f32 %v2009_v35, %v545_v52 }
 0x5be   :  { %v2018_v39 = vadd.f32 %v2014_v37, %v550_v38 }
 0x5c0   :  { %1585 = vmatmul.msk.f32.vlgmr.msrb.gmra.mxu2 %vm77_vm0, %v2018_v39 }
 0x61d   :  { %v508_v40 = vpop.xlane.xlu2 %507 }
 0x61e   :  { %v510_v41 = vmul.f32 %v508_v40, %v1878_v10 }
 0x620   :  { %v2023_v42 = vsub.f32 %v500_v27, %v510_v41 }
 0x622   :  { %v514_v43 = vmul.f32 %v2023_v42, %v2023_v42 }
 0x624   :  { %v518_v44 = vsel %vm77_vm0, %v514_v43, 0.0 }
 0x625   :  { %519 = vadd.xlane.f32.xlu2 %v518_v44 }
 0x643   :  { %v588_v46 = vpop.f32.mrf.mxu2 }
 0x644   :  { %v2034_v47 = vadd.f32 %v2031_v45, %v588_v46 }
 0x646   :  { %v2037_v48 = vmul.f32 0.70710677, %v2034_v47 }
 0x648   :  { %v598_v49 = vmul.f32 %v2037_v48, %v2037_v48 }
 0x64a   :  { %v599_v51 = vmin.f32 %v598_v49, 16.0 }
 0x64c   :  { %v611_v53 = vmul.f32 3.8918573e-05, %v599_v51  ;;  %v600_v61 = vmul.f32 2.1237322e-06, %v599_v51 }
 0x64e   :  { %v612_v54 = vadd.f32 0.001143296, %v611_v53  ;;  %v601_v63 = vadd.f32 0.00028619796, %v600_v61 }
 0x650   :  { %v613_v55 = vmul.f32 %v612_v54, %v599_v51  ;;  %v602_v2 = vmul.f32 %v601_v63, %v599_v51  ;;  %v594_v54 = vmul.f32 0.5, %v2034_v47 }
 0x652   :  { %v614_v56 = vadd.f32 0.014752088, %v613_v55  ;;  %v603_v6 = vadd.f32 0.0036580483, %v602_v2 }
 0x654   :  { %v615_v57 = vmul.f32 %v614_v56, %v599_v51  ;;  %v604_v8 = vmul.f32 %v603_v6, %v599_v51 }
 0x656   :  { %v616_v58 = vadd.f32 0.112945676, %v615_v57  ;;  %v605_v16 = vadd.f32 0.05243302, %v604_v8 }
 0x658   :  { %v617_v59 = vmul.f32 %v616_v58, %v599_v51  ;;  %v606_v20 = vmul.f32 %v605_v16, %v599_v51 }
 0x65a   :  { %v618_v60 = vadd.f32 0.4994258, %v617_v59  ;;  %v607_v22 = vadd.f32 0.18741608, %v606_v20 }
 0x65c   :  { %v619_v62 = vmul.f32 %v618_v60, %v599_v51  ;;  %v608_v26 = vmul.f32 %v607_v22, %v599_v51 }
 0x65e   :  { %v620_v0 = vadd.f32 1.0, %v619_v62  ;;  %v609_v32 = vadd.f32 1.1283791, %v608_v26 }
 0x660   :  { %1698 = vrcp.f32 %v620_v0  ;;  %v632_v28 = vand.u32 2147483648, %v620_v0  ;;  %vm626_vm15 = vweird.f32 %v620_v0  ;;  %v630_v30 = vand.u32 2147483647, %v620_v0 }
 0x661   :  { %v610_v40 = vmul.f32 %v609_v32, %v2037_v48 }
 0x662   :  { %v633_v34 = vor.u32 1.1754944e-38, %v632_v28  ;;  %vm631_vm3 = vcmp.eq.f32.partialorder %v630_v30, 8.507059e+37 }
 0x666   :  { %v1699_v12 = vpop.eup %1698 }
 0x667   :  { %v622_v17 = vmul.f32 %v1699_v12, %v620_v0  ;;  %vm627_vm14 = vweird.f32 %v1699_v12 }
 0x668   :  { %vm628_vm1 = vmor %vm626_vm15, %vm627_vm14 }
 0x669   :  { %v623_v21 = vsub.f32 1.0, %v622_v17 }
 0x66b   :  { %v624_v23 = vmul.f32 %v1699_v12, %v623_v21 }
 0x66d   :  { %v625_v27 = vadd.f32 %v1699_v12, %v624_v23 }
 0x66f   :  { %v629_v33 = vsel %vm628_vm1, %v1699_v12, %v625_v27 }
 0x670   :  { %v634_v52 = vsel %vm631_vm3, %v633_v34, %v629_v33 }
 0x671   :  { %v635_v43 = vmul.f32 %v634_v52, %v610_v40 }
 0x673   :  { %v1587_v49 = vclamps-f32 %v635_v43, 1.0 }
 0x675   :  { %v678_v53 = vadd.f32 1.0, %v1587_v49  ;;  %v1593_v49 = vld [vmem:[%s2356_s23 + $0x30] sm:$0xff] }
 0x677   :  { %v680_v55 = vmul.f32 %v678_v53, %v594_v54  ;;  %v1592_v53 = vld [vmem:[%s2356_s23 + $0x28] sm:$0xff] }
 0x698   :  { %v520_v14 = vpop.xlane.xlu2 %519 }
 0x699   :  { %v522_v18 = vmul.f32 %v520_v14, %v1878_v10 }
 0x69b   :  { %v524_v19 = vadd.f32 1e-12, %v522_v18 }
 0x69d   :  { %1700 = vrsqrt.f32 %v524_v19  ;;  %vm541_vm4 = vweird.f32 %v524_v19 }
 0x6a3   :  { %v1701_v24 = vpop.eup %1700 }
 0x6a4   :  { %v536_v25 = vmul.f32 %v1701_v24, %v524_v19  ;;  %vm542_vm2 = vweird.f32 %v1701_v24 }
 0x6a5   :  { %vm543_vm5 = vmor %vm541_vm4, %vm542_vm2 }
 0x6a6   :  { %v537_v29 = vmul.f32 %v1701_v24, %v536_v25 }
 0x6a8   :  { %v538_v31 = vmul.f32 0.5, %v537_v29 }
 0x6aa   :  { %v539_v36 = vsub.f32 1.5, %v538_v31 }
 0x6ac   :  { %v540_v38 = vmul.f32 %v1701_v24, %v539_v36 }
 0x6ae   :  { %v544_v41 = vsel %vm543_vm5, %v1701_v24, %v540_v38 }
 0x6af   :  { %v546_v44 = vmul.f32 %v544_v41, %v2023_v42 }
 0x6b1   :  { %v551_v46 = vmul.f32 %v2009_v35, %v546_v44  ;;  %v1659_v35 = vld [vmem:[%s2330_s13] ss:$0 sm:$0xff] }
 0x6b3   :  { %v2070_v51 = vadd.f32 %v2014_v37, %v551_v46  ;;  %v1594_v46 = vld [vmem:[%s2356_s23 + $0x38] sm:$0xff] }
 0x6b4   :  { %810 = vmatpush.msra.mxu1 %v1594_v46 }
 0x6b5   :  { %1586 = vmatmul.msk.f32.gmra.mxu2 %vm77_vm0, %v2070_v51 }
 0x6b6   :  { %811 = vmatpush.msra.mxu1 %v1593_v49 }
 0x6b8   :  { %812 = vmatpush.msra.mxu1 %v1592_v53 }
 0x6bd   :  { %1589 = vmatmul.msk.f32.vlgmr.msra.gmra.mxu2 %vm694_vm6, %v680_v55 }
 0x738   :  { %v591_v48 = vpop.f32.mrf.mxu2 }
 0x739   :  { %v592_v56 = vadd.f32 %v2031_v45, %v591_v48 }
 0x73b   :  { %v597_v42 = vmul.f32 0.70710677, %v592_v56  ;;  %v595_v30 = vmul.f32 0.5, %v592_v56 }
 0x73d   :  { %v638_v57 = vmul.f32 %v597_v42, %v597_v42 }
 0x73f   :  { %v639_v37 = vmin.f32 %v638_v57, 16.0 }
 0x740   :  { %v718_v58 = vpop.f32.mrf.mxu2 }
 0x741   :  { %v640_v59 = vmul.f32 2.1237322e-06, %v639_v37  ;;  %v651_v60 = vmul.f32 3.8918573e-05, %v639_v37  ;;  %v719_v61 = vadd.f32 %v1659_v35, %v718_v58 }
 0x743   :  { %v641_v62 = vadd.f32 0.00028619796, %v640_v59  ;;  %v652_v47 = vadd.f32 0.001143296, %v651_v60  ;;  %v724_v63 = vadd.f32 %v719_v61, %v2018_v39  ;;  %v1660_v59 = vld [vmem:[%s2331_s14] ss:$0 sm:$0xff] }
 0x745   :  { %v642_v0 = vmul.f32 %v641_v62, %v639_v37  ;;  %v653_v2 = vmul.f32 %v652_v47, %v639_v37  ;;  %v728_v3 = vsel %vm77_vm0, %v724_v63, 0.0  ;;  %v1661_v62 = vld [vmem:[%s2332_s15] ss:$0 sm:$0xff] }
 0x746   :  { %729 = vadd.xlane.f32.xlu2 %v728_v3 }
 0x747   :  { %v654_v45 = vadd.f32 0.014752088, %v653_v2  ;;  %v643_v4 = vadd.f32 0.0036580483, %v642_v0 }
 0x749   :  { %v655_v5 = vmul.f32 %v654_v45, %v639_v37  ;;  %v644_v7 = vmul.f32 %v643_v4, %v639_v37 }
 0x74b   :  { %v656_v6 = vadd.f32 0.112945676, %v655_v5  ;;  %v645_v12 = vadd.f32 0.05243302, %v644_v7  ;;  %v1662_v5 = vld [vmem:[%s2359_s2 + $0x1] ss:$0 sm:$0xff] }
 0x74c   :  { %s2362_s2 = smov 48  }
 0x74d   :  { %v657_v8 = vmul.f32 %v656_v6, %v639_v37  ;;  %v646_v15 = vmul.f32 %v645_v12, %v639_v37 }
 0x74f   :  { %v658_v9 = vadd.f32 0.4994258, %v657_v8  ;;  %v647_v16 = vadd.f32 0.18741608, %v646_v15 }
 0x751   :  { %v659_v13 = vmul.f32 %v658_v9, %v639_v37  ;;  %v648_v39 = vmul.f32 %v647_v16, %v639_v37 }
 0x753   :  { %v660_v14 = vadd.f32 1.0, %v659_v13  ;;  %v649_v20 = vadd.f32 1.1283791, %v648_v39 }
 0x755   :  { %1702 = vrcp.f32 %v660_v14  ;;  %v672_v19 = vand.u32 2147483648, %v660_v14  ;;  %v670_v22 = vand.u32 2147483647, %v660_v14  ;;  %vm666_vm11 = vweird.f32 %v660_v14 }
 0x756   :  { %v650_v25 = vmul.f32 %v649_v20, %v597_v42 }
 0x757   :  { %v673_v24 = vor.u32 1.1754944e-38, %v672_v19  ;;  %vm671_vm13 = vcmp.eq.f32.partialorder %v670_v22, 8.507059e+37 }
 0x75b   :  { %v1703_v17 = vpop.eup %1702 }
 0x75c   :  { %v662_v18 = vmul.f32 %v1703_v17, %v660_v14  ;;  %vm667_vm7 = vweird.f32 %v1703_v17 }
 0x75d   :  { %vm668_vm12 = vmor %vm666_vm11, %vm667_vm7 }
 0x75e   :  { %v663_v50 = vsub.f32 1.0, %v662_v18 }
 0x760   :  { %v664_v21 = vmul.f32 %v1703_v17, %v663_v50 }
 0x762   :  { %v665_v23 = vadd.f32 %v1703_v17, %v664_v21 }
 0x764   :  { %v669_v26 = vsel %vm668_vm12, %v1703_v17, %v665_v23 }
 0x765   :  { %v674_v27 = vsel %vm671_vm13, %v673_v24, %v669_v26 }
 0x766   :  { %v675_v28 = vmul.f32 %v674_v27, %v650_v25 }
 0x768   :  { %v1588_v29 = vclamps-f32 %v675_v28, 1.0 }
 0x76a   :  { %v679_v31 = vadd.f32 1.0, %v1588_v29 }
 0x76c   :  { %v681_v32 = vmul.f32 %v679_v31, %v595_v30 }
 0x76e   :  { %1590 = vmatmul.msk.f32.gmra.mxu2 %vm694_vm6, %v681_v32 }
 0x7b9   :  { %v730_v33 = vpop.xlane.xlu2 %729 }
 0x7ba   :  { %v734_v34 = vmul.f32 %v730_v33, %v1878_v10 }
 0x7bc   :  { %v736_v36 = vsub.f32 %v724_v63, %v734_v34 }
 0x7be   :  { %v738_v52 = vmul.f32 %v736_v36, %v736_v36 }
 0x7c0   :  { %v740_v38 = vsel %vm77_vm0, %v738_v52, 0.0 }
 0x7c1   :  { %741 = vadd.xlane.f32.xlu1 %v740_v38 }
 0x7f1   :  { %v721_v40 = vpop.f32.mrf.mxu2 }
 0x7f2   :  { %v722_v41 = vadd.f32 %v1659_v35, %v721_v40 }
 0x7f4   :  { %v725_v43 = vadd.f32 %v722_v41, %v2070_v51  ;;  %v1591_v51 = vld [vmem:[%s2356_s23 + $0x20] sm:$0xff] }
 0x7f5   :  { %813 = vmatpush.msra.mxu1 %v1591_v51 }
 0x7f6   :  { %v731_v44 = vsel %vm77_vm0, %v725_v43, 0.0 }
 0x7f7   :  { %732 = vadd.xlane.f32.xlu2 %v731_v44 }
 0x834   :  { %v742_v54 = vpop.xlane.xlu1 %741 }
 0x835   :  { %v746_v55 = vmul.f32 %v742_v54, %v1878_v10 }
 0x837   :  { %v748_v48 = vadd.f32 1e-12, %v746_v55 }
 0x839   :  { %1704 = vrsqrt.f32 %v748_v48  ;;  %vm756_vm15 = vweird.f32 %v748_v48 }
 0x83f   :  { %v1705_v56 = vpop.eup %1704 }
 0x840   :  { %v751_v42 = vmul.f32 %v1705_v56, %v748_v48  ;;  %vm757_vm14 = vweird.f32 %v1705_v56 }
 0x841   :  { %vm758_vm1 = vmor %vm756_vm15, %vm757_vm14 }
 0x842   :  { %v752_v57 = vmul.f32 %v1705_v56, %v751_v42 }
 0x844   :  { %v753_v35 = vmul.f32 0.5, %v752_v57 }
 0x846   :  { %v754_v37 = vsub.f32 1.5, %v753_v35 }
 0x848   :  { %v755_v58 = vmul.f32 %v1705_v56, %v754_v37 }
 0x84a   :  { %v759_v60 = vsel %vm758_vm1, %v1705_v56, %v755_v58 }
 0x84b   :  { %v770_v61 = vmul.f32 %v759_v60, %v736_v36 }
 0x84d   :  { %v775_v47 = vmul.f32 %v1660_v59, %v770_v61 }
 0x84f   :  { %v2106_v63 = vadd.f32 %v1661_v62, %v775_v47 }
 0x851   :  { %1596 = vmatmul.msk.f32.vlgmr.msra.gmra.mxu1 %vm77_vm0, %v2106_v63 }
 0x86a   :  { %v733_v0 = vpop.xlane.xlu2 %732 }
 0x86b   :  { %v735_v2 = vmul.f32 %v733_v0, %v1878_v10 }
 0x86d   :  { %v737_v3 = vsub.f32 %v725_v43, %v735_v2 }
 0x86f   :  { %v739_v45 = vmul.f32 %v737_v3, %v737_v3 }
 0x871   :  { %v743_v4 = vsel %vm77_vm0, %v739_v45, 0.0 }
 0x872   :  { %744 = vadd.xlane.f32.xlu0 %v743_v4 }
 0x8ce   :  { %v815_v6 = vpop.f32.mrf.mxu1 }
 0x8cf   :  { %v816_v7 = vadd.f32 %v1662_v5, %v815_v6 }
 0x8d1   :  { %822 = vrot.lane.b32.xlu1 %v816_v7, %s1750_s6  ;;  %890 = vrot.lane.b32.xlu2 %v816_v7, %s1752_s26 }
 0x8d2   :  { %888 = vrot.lane.b32.xlu0 %v816_v7, %s1749_s24 }
 0x8e5   :  { %v745_v8 = vpop.xlane.xlu0 %744 }
 0x8e6   :  { %v747_v9 = vmul.f32 %v745_v8, %v1878_v10 }
 0x8e8   :  { %v749_v12 = vadd.f32 1e-12, %v747_v9 }
 0x8ea   :  { %1706 = vrsqrt.f32 %v749_v12  ;;  %vm766_vm3 = vweird.f32 %v749_v12 }
 0x8f0   :  { %v1707_v13 = vpop.eup %1706 }
 0x8f1   :  { %v761_v14 = vmul.f32 %v1707_v13, %v749_v12  ;;  %vm767_vm2 = vweird.f32 %v1707_v13 }
 0x8f2   :  { %vm768_vm4 = vmor %vm766_vm3, %vm767_vm2 }
 0x8f3   :  { %v762_v15 = vmul.f32 %v1707_v13, %v761_v14 }
 0x8f5   :  { %v763_v16 = vmul.f32 0.5, %v762_v15 }
 0x8f7   :  { %v764_v17 = vsub.f32 1.5, %v763_v16 }
 0x8f9   :  { %v765_v39 = vmul.f32 %v1707_v13, %v764_v17 }
 0x8fb   :  { %v769_v18 = vsel %vm768_vm4, %v1707_v13, %v765_v39 }
 0x8fc   :  { %v771_v50 = vmul.f32 %v769_v18, %v737_v3 }
 0x8fe   :  { %v776_v19 = vmul.f32 %v1660_v59, %v771_v50 }
 0x900   :  { %v2119_v20 = vadd.f32 %v1661_v62, %v776_v19  ;;  %v1613_v19 = vld [vmem:[%s2361_s0 + $0x38] sm:$0xff] }
 0x902   :  { %1597 = vmatmul.msk.f32.gmra.mxu1 %vm77_vm0, %v2119_v20 }
 0x92b   :  { %v891_v21 = vpop.permute.xlu2 %890 }
 0x92c   :  { %1601 = vmatpush.xpose.msk.msrb.mxu1 %vm180_vm8, %v891_v21  ;;  %v1612_v21 = vld [vmem:[%s2361_s0 + $0x30] sm:$0xff] }
 0x943   :  { %v823_v22 = vpop.permute.xlu1 %822 }
 0x944   :  { %v889_v23 = vpop.permute.xlu0 %888  ;;  %1598 = vmatpush.xpose.msk.msrb.mxu3 %vm180_vm8, %v823_v22  ;;  %v1611_v22 = vld [vmem:[%s2361_s0 + $0x28] sm:$0xff] }
 0x945   :  { %1602 = vmatmul.msk.f32.vlgmr.msrb.gmra.mxu1 %vm180_vm8, %v889_v23  ;;  %v1610_v23 = vld [vmem:[%s2361_s0 + $0x20] sm:$0xff] }
 0x947   :  { %1599 = vmatmul.msk.f32.vlgmr.msrb.gmra.mxu3 %vm180_vm8, %v816_v7 }
 0x97f   :  { %v818_v24 = vpop.f32.mrf.mxu1 }
 0x980   :  { %v819_v25 = vadd.f32 %v1662_v5, %v818_v24 }
 0x982   :  { %1027 = vrot.lane.b32.xlu0 %v819_v25, %s1749_s24  ;;  %1029 = vrot.lane.b32.xlu1 %v819_v25, %s1752_s26  ;;  %s2363_s24 = smov 16  }
 0x98a   :  { %961 = vrot.lane.b32.xlu0 %v819_v25, %s1750_s6  ;;  %859 = vrot.lane.b32.xlu1 %v816_v7, %s1753_s28 }
 0x9c2   :  { %v913_v26 = vpop.f32.mrf.mxu1 }
 0x9c3   :  { %v916_v27 = vmul.f32 0.25, %v913_v26 }
 0x9c5   :  { %v917_v28 = vadd.f32 %v916_v27, %v1935_v1 }
 0x9c7   :  { %v918_v29 = vsel %vm208_vm9, %v917_v28, -inf }
 0x9c8   :  { %919 = vmax.xlane.f32.xlu1 %v918_v29 }
 0x9ca   :  { %v845_v30 = vpop.f32.mrf.mxu3 }
 0x9cb   :  { %v848_v31 = vmul.f32 0.25, %v845_v30 }
 0x9cd   :  { %v849_v32 = vadd.f32 %v848_v31, %v1935_v1 }
 0x9cf   :  { %v850_v33 = vsel %vm208_vm9, %v849_v32, -inf }
 0x9d0   :  { %851 = vmax.xlane.f32.xlu2 %v850_v33 }
 0x9e1   :  { %1066 = vrot.lane.b32.xlu1 %v819_v25, %s2362_s2 }
 0x9e8   :  { %927 = vrot.lane.b32.xlu2 %v816_v7, %s2362_s2 }
 0x9f4   :  { %v1030_v34 = vpop.permute.xlu1 %1029  ;;  %v1028_v36 = vpop.permute.xlu0 %1027 }
 0x9f5   :  { %1607 = vmatpush.xpose.msk.msra.mxu1 %vm180_vm8, %v1030_v34 }
 0x9f8   :  { %1608 = vmatmul.msk.f32.vlgmr.msra.gmra.mxu1 %vm180_vm8, %v1028_v36 }
 0x9fc   :  { %v860_v52 = vpop.permute.xlu1 %859  ;;  %v962_v38 = vpop.permute.xlu0 %961 }
 0x9fd   :  { %880 = vmatpush.msra.mxu0 %v860_v52 }
 0x9ff   :  { %1604 = vmatpush.xpose.msk.msrb.mxu0 %vm180_vm8, %v962_v38 }
 0xa3b   :  { %v920_v40 = vpop.xlane.xlu1 %919 }
 0xa3c   :  { %v921_v1 = vsub.f32 %v917_v28, %v920_v40 }
 0xa3e   :  { %v922_v41 = vmul.f32 1.442695, %v921_v1 }
 0xa40   :  { %1708 = vpow2.f32 %v922_v41 }
 0xa43   :  { %v852_v43 = vpop.xlane.xlu2 %851 }
 0xa44   :  { %v853_v44 = vsub.f32 %v849_v32, %v852_v43  ;;  %v1663_v32 = vld [vmem:[%s2324_s7 + $0x1] ss:$0 sm:$0xff] }
 0xa46   :  { %v1709_v46 = vpop.eup %1708  ;;  %v854_v49 = vmul.f32 1.442695, %v853_v44 }
 0xa47   :  { %v924_v53 = vsel %vm208_vm9, %v1709_v46, 0.0 }
 0xa48   :  { %1710 = vpow2.f32 %v854_v49  ;;  %925 = vadd.xlane.f32.xlu2 %v924_v53 }
 0xa4b   :  { %v928_v51 = vpop.permute.xlu2 %927 }
 0xa4c   :  { %948 = vmatpush.msra.mxu3 %v928_v51 }
 0xa4d   :  { %1603 = vmatmul.msk.f32.vlgmr.msra.gmra.mxu3 %vm208_vm9, %v1709_v46 }
 0xa4e   :  { %v1711_v54 = vpop.eup %1710 }
 0xa4f   :  { %1600 = vmatmul.msk.f32.vlgmr.msra.gmra.mxu0 %vm208_vm9, %v1711_v54  ;;  %v856_v3 = vsel %vm208_vm9, %v1711_v54, 0.0 }
 0xa50   :  { %1129 = vmatpush.msra.mxu0 %v1613_v19  ;;  %v1666_v19 = vld [vmem:[%s2328_s11 + $0x1] ss:$0 sm:$0xff] }
 0xa52   :  { %1130 = vmatpush.msra.mxu0 %v1612_v21 }
 0xa53   :  { %v1067_v55 = vpop.permute.xlu1 %1066 }
 0xa54   :  { %1087 = vmatpush.msrb.mxu3 %v1067_v55  ;;  %1131 = vmatpush.msra.mxu0 %v1611_v22 }
 0xa56   :  { %1132 = vmatpush.msra.mxu0 %v1610_v23 }
 0xa57   :  { %1605 = vmatmul.msk.f32.vlgmr.msrb.gmra.mxu0 %vm180_vm8, %v819_v25 }
 0xa75   :  { %v1052_v48 = vpop.f32.mrf.mxu1 }
 0xa76   :  { %v1055_v56 = vmul.f32 0.25, %v1052_v48 }
 0xa78   :  { %v1056_v42 = vadd.f32 %v1055_v56, %v1944_v11  ;;  %v1621_v56 = vld [vmem:[%s2327_s10 + $0x30] sm:$0xff] }
 0xa7a   :  { %v1057_v57 = vsel %vm208_vm9, %v1056_v42, -inf }
 0xa7b   :  { %1058 = vmax.xlane.f32.xlu0 %v1057_v57  ;;  %v1619_v57 = vld [vmem:[%s2327_s10 + $0x20] sm:$0xff] }
 0xabb   :  { %v926_v8 = vpop.xlane.xlu2 %925 }
 0xacc   :  { %v882_v35 = vpop.f32.mrf.mxu0 }
 0xad0   :  { %v950_v9 = vpop.f32.mrf.mxu3 }
 0xad4   :  { %v984_v37 = vpop.f32.mrf.mxu0 }
 0xad5   :  { %v987_v58 = vmul.f32 0.25, %v984_v37 }
 0xad7   :  { %v988_v59 = vadd.f32 %v987_v58, %v1944_v11 }
 0xad9   :  { %v989_v60 = vsel %vm208_vm9, %v988_v59, -inf }
 0xada   :  { %990 = vmax.xlane.f32.xlu0 %v989_v60 }
 0xaee   :  { %v1059_v61 = vpop.xlane.xlu0 %1058  ;;  %998 = vrot.lane.b32.xlu0 %v819_v25, %s1753_s28 }
 0xaef   :  { %v1060_v62 = vsub.f32 %v1056_v42, %v1059_v61  ;;  %v1620_v42 = vld [vmem:[%s2327_s10 + $0x28] sm:$0xff] }
 0xaf1   :  { %v1061_v47 = vmul.f32 1.442695, %v1060_v62 }
 0xaf3   :  { %1712 = vpow2.f32 %v1061_v47 }
 0xaf9   :  { %v1713_v0 = vpop.eup %1712 }
 0xafa   :  { %1609 = vmatmul.msk.f32.vlgmr.msrb.gmra.mxu3 %vm208_vm9, %v1713_v0  ;;  %v1063_v2 = vsel %vm208_vm9, %v1713_v0, 0.0 }
 0xafb   :  { %1064 = vadd.xlane.f32.xlu1 %v1063_v2  ;;  %v1664_v2 = vld [vmem:[%s2325_s8 + $0x1] ss:$0 sm:$0xff] }
 0xb18   :  { %857 = vadd.xlane.f32.xlu0 %v856_v3 }
 0xb4d   :  { %v991_v45 = vpop.xlane.xlu0 %990 }
 0xb4e   :  { %v992_v11 = vsub.f32 %v988_v59, %v991_v45 }
 0xb50   :  { %v993_v4 = vmul.f32 1.442695, %v992_v11  ;;  %v1665_v11 = vld [vmem:[%s2326_s9 + $0x1] ss:$0 sm:$0xff] }
 0xb52   :  { %1714 = vpow2.f32 %v993_v4 }
 0xb53   :  { %1716 = vrcp.f32 %v926_v8 }
 0xb58   :  { %v1715_v5 = vpop.eup %1714 }
 0xb59   :  { %v995_v6 = vsel %vm208_vm9, %v1715_v5, 0.0  ;;  %v1717_v12 = vpop.eup %1716 }
 0xb5a   :  { %996 = vadd.xlane.f32.xlu2 %v995_v6  ;;  %v954_v13 = vmul.f32 %v1717_v12, %v950_v9 }
 0xb60   :  { %v999_v7 = vpop.permute.xlu0 %998 }
 0xb61   :  { %1019 = vmatpush.msrb.mxu2 %v999_v7 }
 0xb62   :  { %1606 = vmatmul.msk.f32.vlgmr.msrb.gmra.mxu2 %vm208_vm9, %v1715_v5 }
 0xb6e   :  { %v1065_v14 = vpop.xlane.xlu1 %1064 }
 0xb6f   :  { %1718 = vrcp.f32 %v1065_v14 }
 0xb72   :  { %956 = vrot.lane.b32.xlu2 %v954_v13, %s2363_s24 }
 0xb75   :  { %v1719_v15 = vpop.eup %1718 }
 0xb7d   :  { %v1089_v16 = vpop.f32.mrf.mxu3 }
 0xb7e   :  { %v1093_v17 = vmul.f32 %v1719_v15, %v1089_v16 }
 0xb80   :  { %1095 = vrot.lane.b32.xlu1 %v1093_v17, %s2363_s24 }
 0xb8b   :  { %v858_v39 = vpop.xlane.xlu0 %857 }
 0xb8c   :  { %1720 = vrcp.f32 %v858_v39 }
 0xb92   :  { %v1721_v18 = vpop.eup %1720 }
 0xb93   :  { %v886_v50 = vmul.f32 %v1721_v18, %v882_v35 }
 0xb95   :  { %887 = vst.msk [vmem:[#allocation2] sm:$0xff] %vm180_vm8, %v886_v50 }
 0xbcd   :  { %v997_v24 = vpop.xlane.xlu2 %996 }
 0xbce   :  { %1722 = vrcp.f32 %v997_v24 }
 0xbd4   :  { %v1723_v27 = vpop.eup %1722 }
 0xbd5   :  { %v957_v25 = vpop.permute.xlu2 %956 }
 0xbd6   :  { %959 = vst.msk [vmem:[#allocation2] sm:$0xff] %vm318_vm10, %v957_v25 }
 0xbdd   :  { %v1099_v26 = vld [vmem:[#allocation2] sm:$0xff] }
 0xbde   :  { %1615 = vmatmul.msk.f32.vlgmr.msra.gmra.mxu0 %vm77_vm0, %v1099_v26  ;;  %v1635_v26 = vld [vmem:[%s2329_s12 + $0x78] sm:$0xff] }
 0xbdf   :  { %1355 = vmatpush.msrb.mxu1 %v1635_v26 }
 0xbe5   :  { %v1021_v28 = vpop.f32.mrf.mxu2 }
 0xbe6   :  { %v1025_v29 = vmul.f32 %v1723_v27, %v1021_v28 }
 0xbe8   :  { %1026 = vst.msk [vmem:[#allocation2 + $0x8] sm:$0xff] %vm180_vm8, %v1025_v29  ;;  %v1634_v29 = vld [vmem:[%s2329_s12 + $0x70] sm:$0xff] }
 0xbe9   :  { %1356 = vmatpush.msrb.mxu1 %v1634_v29 }
 0xbf2   :  { %v1096_v30 = vpop.permute.xlu1 %1095 }
 0xbf3   :  { %1098 = vst.msk [vmem:[#allocation2 + $0x8] sm:$0xff] %vm318_vm10, %v1096_v30 }
 0xbfa   :  { %v1100_v31 = vld [vmem:[#allocation2 + $0x8] sm:$0xff] }
 0xbfb   :  { %1616 = vmatmul.msk.f32.gmra.mxu0 %vm77_vm0, %v1100_v31 }
 0xc5b   :  { %v1134_v33 = vpop.f32.mrf.mxu0 }
 0xc5c   :  { %v1135_v34 = vadd.f32 %v1663_v32, %v1134_v33 }
 0xc5e   :  { %v1140_v36 = vadd.f32 %v1135_v34, %v2106_v63 }
 0xc60   :  { %v1146_v52 = vsel %vm77_vm0, %v1140_v36, 0.0 }
 0xc61   :  { %1147 = vadd.xlane.f32.xlu0 %v1146_v52 }
 0xc78   :  { %v1137_v38 = vpop.f32.mrf.mxu0 }
 0xc79   :  { %v1138_v40 = vadd.f32 %v1663_v32, %v1137_v38  ;;  %v1633_v32 = vld [vmem:[%s2329_s12 + $0x68] sm:$0xff] }
 0xc7a   :  { %1357 = vmatpush.msrb.mxu1 %v1633_v32 }
 0xc7b   :  { %v1141_v1 = vadd.f32 %v1138_v40, %v2119_v20  ;;  %v1622_v20 = vld [vmem:[%s2327_s10 + $0x38] sm:$0xff] }
 0xc7c   :  { %1228 = vmatpush.msra.mxu2 %v1622_v20  ;;  %v1631_v40 = vld [vmem:[%s2329_s12 + $0x58] sm:$0xff] }
 0xc7d   :  { %v1149_v41 = vsel %vm77_vm0, %v1141_v1, 0.0 }
 0xc7e   :  { %1150 = vadd.xlane.f32.xlu0 %v1149_v41  ;;  %1229 = vmatpush.msra.mxu2 %v1621_v56  ;;  %v1630_v41 = vld [vmem:[%s2329_s12 + $0x50] sm:$0xff] }
 0xc80   :  { %1230 = vmatpush.msra.mxu2 %v1620_v42 }
 0xc82   :  { %1231 = vmatpush.msra.mxu2 %v1619_v57 }
 0xcd4   :  { %v1148_v43 = vpop.xlane.xlu0 %1147 }
 0xcd5   :  { %v1152_v44 = vmul.f32 %v1148_v43, %v1878_v10 }
 0xcd7   :  { %v1154_v46 = vsub.f32 %v1140_v36, %v1152_v44  ;;  %v1632_v36 = vld [vmem:[%s2329_s12 + $0x60] sm:$0xff] }
 0xcd8   :  { %1358 = vmatpush.msrb.mxu1 %v1632_v36 }
 0xcd9   :  { %v1156_v49 = vmul.f32 %v1154_v46, %v1154_v46 }
 0xcda   :  { %1359 = vmatpush.msrb.mxu1 %v1631_v40 }
 0xcdb   :  { %v1158_v53 = vsel %vm77_vm0, %v1156_v49, 0.0 }
 0xcdc   :  { %1159 = vadd.xlane.f32.xlu2 %v1158_v53  ;;  %1360 = vmatpush.msrb.mxu1 %v1630_v41  ;;  %v1628_v53 = vld [vmem:[%s2329_s12 + $0x40] sm:$0xff] }
 0xcf1   :  { %v1151_v51 = vpop.xlane.xlu0 %1150 }
 0xcf2   :  { %v1153_v63 = vmul.f32 %v1151_v51, %v1878_v10 }
 0xcf4   :  { %v1155_v54 = vsub.f32 %v1141_v1, %v1153_v63 }
 0xcf6   :  { %v1157_v55 = vmul.f32 %v1155_v54, %v1155_v54 }
 0xcf8   :  { %v1161_v48 = vsel %vm77_vm0, %v1157_v55, 0.0 }
 0xcf9   :  { %1162 = vadd.xlane.f32.xlu0 %v1161_v48 }
 0xd4f   :  { %v1160_v35 = vpop.xlane.xlu2 %1159 }
 0xd50   :  { %v1164_v37 = vmul.f32 %v1160_v35, %v1878_v10 }
 0xd52   :  { %v1166_v58 = vadd.f32 1e-12, %v1164_v37 }
 0xd54   :  { %1724 = vrsqrt.f32 %v1166_v58  ;;  %vm1174_vm9 = vweird.f32 %v1166_v58 }
 0xd5a   :  { %v1725_v59 = vpop.eup %1724 }
 0xd5b   :  { %v1169_v60 = vmul.f32 %v1725_v59, %v1166_v58  ;;  %vm1175_vm8 = vweird.f32 %v1725_v59 }
 0xd5c   :  { %vm1176_vm10 = vmor %vm1174_vm9, %vm1175_vm8 }
 0xd5d   :  { %v1170_v61 = vmul.f32 %v1725_v59, %v1169_v60 }
 0xd5f   :  { %v1171_v62 = vmul.f32 0.5, %v1170_v61 }
 0xd61   :  { %v1172_v47 = vsub.f32 1.5, %v1171_v62 }
 0xd63   :  { %v1173_v0 = vmul.f32 %v1725_v59, %v1172_v47 }
 0xd65   :  { %v1177_v3 = vsel %vm1176_vm10, %v1725_v59, %v1173_v0 }
 0xd66   :  { %v1188_v45 = vmul.f32 %v1177_v3, %v1154_v46  ;;  %v1629_v46 = vld [vmem:[%s2329_s12 + $0x48] sm:$0xff] }
 0xd67   :  { %1361 = vmatpush.msrb.mxu1 %v1629_v46 }
 0xd68   :  { %v1193_v4 = vmul.f32 %v1664_v2, %v1188_v45 }
 0xd69   :  { %1362 = vmatpush.msrb.mxu1 %v1628_v53 }
 0xd6a   :  { %v2204_v5 = vadd.f32 %v1665_v11, %v1193_v4 }
 0xd6c   :  { %1624 = vmatmul.msk.f32.vlgmr.msra.gmra.mxu2 %vm77_vm0, %v2204_v5  ;;  %v1163_v6 = vpop.xlane.xlu0 %1162 }
 0xd6d   :  { %v1165_v7 = vmul.f32 %v1163_v6, %v1878_v10 }
 0xd6f   :  { %v1167_v8 = vadd.f32 1e-12, %v1165_v7 }
 0xd71   :  { %1726 = vrsqrt.f32 %v1167_v8  ;;  %vm1184_vm7 = vweird.f32 %v1167_v8 }
 0xd77   :  { %v1727_v9 = vpop.eup %1726 }
 0xd78   :  { %v1179_v12 = vmul.f32 %v1727_v9, %v1167_v8  ;;  %vm1185_vm5 = vweird.f32 %v1727_v9 }
 0xd79   :  { %vm1186_vm11 = vmor %vm1184_vm7, %vm1185_vm5 }
 0xd7a   :  { %v1180_v13 = vmul.f32 %v1727_v9, %v1179_v12 }
 0xd7c   :  { %v1181_v14 = vmul.f32 0.5, %v1180_v13 }
 0xd7e   :  { %v1182_v15 = vsub.f32 1.5, %v1181_v14 }
 0xd80   :  { %v1183_v16 = vmul.f32 %v1727_v9, %v1182_v15 }
 0xd82   :  { %v1187_v17 = vsel %vm1186_vm11, %v1727_v9, %v1183_v16 }
 0xd83   :  { %v1189_v39 = vmul.f32 %v1187_v17, %v1155_v54 }
 0xd85   :  { %v1194_v18 = vmul.f32 %v1664_v2, %v1189_v39 }
 0xd87   :  { %v2209_v50 = vadd.f32 %v1665_v11, %v1194_v18 }
 0xd89   :  { %1625 = vmatmul.msk.f32.gmra.mxu2 %vm77_vm0, %v2209_v50 }
 0xdef   :  { %v1233_v21 = vpop.f32.mrf.mxu2 }
 0xdf0   :  { %v2216_v22 = vadd.f32 %v1666_v19, %v1233_v21 }
 0xdf2   :  { %v1241_v23 = vmul.f32 0.70710677, %v2216_v22 }
 0xdf4   :  { %v1243_v24 = vmul.f32 %v1241_v23, %v1241_v23 }
 0xdf6   :  { %v1244_v25 = vmin.f32 %v1243_v24, 16.0  ;;  %v1239_v24 = vmul.f32 0.5, %v2216_v22 }
 0xdf8   :  { %v1245_v27 = vmul.f32 2.1237322e-06, %v1244_v25  ;;  %v1256_v28 = vmul.f32 3.8918573e-05, %v1244_v25 }
 0xdfa   :  { %v1246_v30 = vadd.f32 0.00028619796, %v1245_v27  ;;  %v1257_v31 = vadd.f32 0.001143296, %v1256_v28 }
 0xdfc   :  { %v1247_v33 = vmul.f32 %v1246_v30, %v1244_v25  ;;  %v1258_v34 = vmul.f32 %v1257_v31, %v1244_v25 }
 0xdfe   :  { %v1248_v52 = vadd.f32 0.0036580483, %v1247_v33  ;;  %v1259_v38 = vadd.f32 0.014752088, %v1258_v34 }
 0xe00   :  { %v1260_v1 = vmul.f32 %v1259_v38, %v1244_v25  ;;  %v1249_v43 = vmul.f32 %v1248_v52, %v1244_v25 }
 0xe02   :  { %v1261_v44 = vadd.f32 0.112945676, %v1260_v1  ;;  %v1250_v51 = vadd.f32 0.05243302, %v1249_v43 }
 0xe04   :  { %v1262_v49 = vmul.f32 %v1261_v44, %v1244_v25  ;;  %v1251_v55 = vmul.f32 %v1250_v51, %v1244_v25 }
 0xe06   :  { %v1263_v63 = vadd.f32 0.4994258, %v1262_v49  ;;  %v1252_v42 = vadd.f32 0.18741608, %v1251_v55 }
 0xe08   :  { %v1264_v54 = vmul.f32 %v1263_v63, %v1244_v25  ;;  %v1253_v58 = vmul.f32 %v1252_v42, %v1244_v25 }
 0xe0a   :  { %v1265_v48 = vadd.f32 1.0, %v1264_v54  ;;  %v1254_v0 = vadd.f32 1.1283791, %v1253_v58 }
 0xe0c   :  { %1728 = vrcp.f32 %v1265_v48  ;;  %v1236_v20 = vpop.f32.mrf.mxu2  ;;  %v1275_v2 = vand.u32 2147483647, %v1265_v48  ;;  %v1277_v3 = vand.u32 2147483648, %v1265_v48  ;;  %vm1271_vm13 = vweird.f32 %v1265_v48 }
 0xe0d   :  { %v2243_v56 = vadd.f32 %v1666_v19, %v1236_v20  ;;  %v1255_v12 = vmul.f32 %v1254_v0, %v1241_v23 }
 0xe0e   :  { %v1278_v9 = vor.u32 1.1754944e-38, %v1277_v3  ;;  %vm1276_vm15 = vcmp.eq.f32.partialorder %v1275_v2, 8.507059e+37 }
 0xe0f   :  { %v1242_v57 = vmul.f32 0.70710677, %v2243_v56  ;;  %v1240_v63 = vmul.f32 0.5, %v2243_v56 }
 0xe11   :  { %v1283_v35 = vmul.f32 %v1242_v57, %v1242_v57 }
 0xe12   :  { %v1729_v37 = vpop.eup %1728 }
 0xe13   :  { %v1267_v59 = vmul.f32 %v1729_v37, %v1265_v48  ;;  %v1284_v60 = vmin.f32 %v1283_v35, 16.0  ;;  %vm1272_vm12 = vweird.f32 %v1729_v37  ;;  %v1667_v48 = vld [vmem:[%s2330_s13 + $0x1] ss:$0 sm:$0xff] }
 0xe14   :  { %vm1273_vm14 = vmor %vm1271_vm13, %vm1272_vm12  ;;  %vm1562_vm12 = vcmask 0  }
 0xe15   :  { %v1268_v61 = vsub.f32 1.0, %v1267_v59  ;;  %v1285_v62 = vmul.f32 2.1237322e-06, %v1284_v60  ;;  %v1296_v47 = vmul.f32 3.8918573e-05, %v1284_v60 }
 0xe17   :  { %v1269_v45 = vmul.f32 %v1729_v37, %v1268_v61  ;;  %v1286_v11 = vadd.f32 0.00028619796, %v1285_v62  ;;  %v1297_v4 = vadd.f32 0.001143296, %v1296_v47 }
 0xe19   :  { %v1270_v6 = vadd.f32 %v1729_v37, %v1269_v45  ;;  %v1287_v7 = vmul.f32 %v1286_v11, %v1284_v60  ;;  %v1298_v8 = vmul.f32 %v1297_v4, %v1284_v60  ;;  %v1432_v4 = vld [vmem:[%s2334_s16 + $0x10] sm:$0xff] }
 0xe1b   :  { %v1274_v13 = vsel %vm1273_vm14, %v1729_v37, %v1270_v6  ;;  %v1299_v14 = vadd.f32 0.014752088, %v1298_v8  ;;  %v1288_v16 = vadd.f32 0.0036580483, %v1287_v7  ;;  %v1431_v6 = vld [vmem:[%s2334_s16 + $0x8] sm:$0xff]  ;;  %v1430_v7 = vld [vmem:[%s2334_s16] sm:$0xff] }
 0xe1c   :  { %v1279_v15 = vsel %vm1276_vm15, %v1278_v9, %v1274_v13 }
 0xe1d   :  { %v1280_v17 = vmul.f32 %v1279_v15, %v1255_v12  ;;  %v1300_v39 = vmul.f32 %v1299_v14, %v1284_v60  ;;  %v1289_v21 = vmul.f32 %v1288_v16, %v1284_v60 }
 0xe1f   :  { %v1626_v18 = vclamps-f32 %v1280_v17, 1.0  ;;  %v1301_v19 = vadd.f32 0.112945676, %v1300_v39  ;;  %v1290_v29 = vadd.f32 0.05243302, %v1289_v21 }
 0xe21   :  { %v1323_v25 = vadd.f32 1.0, %v1626_v18  ;;  %v1302_v26 = vmul.f32 %v1301_v19, %v1284_v60  ;;  %v1291_v31 = vmul.f32 %v1290_v29, %v1284_v60  ;;  %v1668_v18 = vld [vmem:[%s2331_s14 + $0x1] ss:$0 sm:$0xff] }
 0xe23   :  { %v1325_v27 = vmul.f32 %v1323_v25, %v1239_v24  ;;  %v1303_v28 = vadd.f32 0.4994258, %v1302_v26  ;;  %v1292_v32 = vadd.f32 0.18741608, %v1291_v31  ;;  %v1669_v24 = vld [vmem:[%s2332_s15 + $0x1] ss:$0 sm:$0xff] }
 0xe25   :  { %v1304_v30 = vmul.f32 %v1303_v28, %v1284_v60  ;;  %1637 = vmatmul.msk.f32.vlgmr.msrb.gmra.mxu1 %vm694_vm6, %v1325_v27  ;;  %v1293_v34 = vmul.f32 %v1292_v32, %v1284_v60 }
 0xe27   :  { %v1305_v23 = vadd.f32 1.0, %v1304_v30  ;;  %v1294_v40 = vadd.f32 1.1283791, %v1293_v34 }
 0xe29   :  { %1730 = vrcp.f32 %v1305_v23  ;;  %v1317_v38 = vand.u32 2147483648, %v1305_v23  ;;  %v1315_v22 = vand.u32 2147483647, %v1305_v23  ;;  %vm1311_vm2 = vweird.f32 %v1305_v23 }
 0xe2a   :  { %v1295_v44 = vmul.f32 %v1294_v40, %v1242_v57 }
 0xe2b   :  { %v1318_v43 = vor.u32 1.1754944e-38, %v1317_v38  ;;  %vm1316_vm4 = vcmp.eq.f32.partialorder %v1315_v22, 8.507059e+37  ;;  %v1470_v22 = vld [vmem:[%s2336_s18 + $0x8] sm:$0xff] }
 0xe2f   :  { %v1731_v33 = vpop.eup %1730 }
 0xe30   :  { %v1307_v36 = vmul.f32 %v1731_v33, %v1305_v23  ;;  %vm1312_vm1 = vweird.f32 %v1731_v33 }
 0xe31   :  { %vm1313_vm3 = vmor %vm1311_vm2, %vm1312_vm1 }
 0xe32   :  { %v1308_v52 = vsub.f32 1.0, %v1307_v36 }
 0xe34   :  { %v1309_v1 = vmul.f32 %v1731_v33, %v1308_v52 }
 0xe36   :  { %v1310_v41 = vadd.f32 %v1731_v33, %v1309_v1  ;;  %v1471_v1 = vld [vmem:[%s2336_s18 + $0x10] sm:$0xff] }
 0xe38   :  { %v1314_v46 = vsel %vm1313_vm3, %v1731_v33, %v1310_v41  ;;  %v1469_v41 = vld [vmem:[%s2336_s18] sm:$0xff] }
 0xe39   :  { %v1319_v49 = vsel %vm1316_vm4, %v1318_v43, %v1314_v46  ;;  %v1670_v43 = vld [vmem:[%s2333_s17] ss:$0 sm:$0xff] }
 0xe3a   :  { %v1320_v53 = vmul.f32 %v1319_v49, %v1295_v44 }
 0xe3c   :  { %v1627_v51 = vclamps-f32 %v1320_v53, 1.0 }
 0xe3e   :  { %v1324_v54 = vadd.f32 1.0, %v1627_v51 }
 0xe40   :  { %v1326_v55 = vmul.f32 %v1324_v54, %v1240_v63  ;;  %v1671_v54 = vld [vmem:[%s2335_s19] ss:$0 sm:$0xff] }
 0xe42   :  { %1638 = vmatmul.msk.f32.gmra.mxu1 %vm694_vm6, %v1326_v55 }
 0xea2   :  { %v1364_v20 = vpop.f32.mrf.mxu1 }
 0xea3   :  { %v1365_v42 = vadd.f32 %v1667_v48, %v1364_v20  ;;  %v1672_v20 = vld [vmem:[%s2337_s20] ss:$0 sm:$0xff] }
 0xea5   :  { %v1370_v35 = vadd.f32 %v1365_v42, %v2204_v5 }
 0xea7   :  { %v1376_v57 = vsel %vm77_vm0, %v1370_v35, 0.0 }
 0xea8   :  { %1377 = vadd.xlane.f32.xlu1 %v1376_v57 }
 0xebf   :  { %v1367_v37 = vpop.f32.mrf.mxu1 }
 0xec0   :  { %v1368_v58 = vadd.f32 %v1667_v48, %v1367_v37 }
 0xec2   :  { %v1371_v59 = vadd.f32 %v1368_v58, %v2209_v50  ;;  %v1433_v50 = vld [vmem:[%s2334_s16 + $0x18] sm:$0xff] }
 0xec3   :  { %1456 = vmatpush.msra.mxu3 %v1433_v50 }
 0xec4   :  { %v1379_v56 = vsel %vm77_vm0, %v1371_v59, 0.0 }
 0xec5   :  { %1380 = vadd.xlane.f32.xlu0 %v1379_v56  ;;  %1457 = vmatpush.msra.mxu3 %v1432_v4 }
 0xec7   :  { %1458 = vmatpush.msra.mxu3 %v1431_v6 }
 0xec9   :  { %1459 = vmatpush.msra.mxu3 %v1430_v7 }
 0xf1b   :  { %v1378_v60 = vpop.xlane.xlu1 %1377 }
 0xf1c   :  { %v1382_v61 = vmul.f32 %v1378_v60, %v1878_v10 }
 0xf1e   :  { %v1384_v62 = vsub.f32 %v1370_v35, %v1382_v61  ;;  %v27_v35 = vstv %s2338_s21 }
 0xf1f   :  { %28 = vst [vmem:[#allocation3] sm:$0x1] %v27_v35 }
 0xf20   :  { %v1386_v47 = vmul.f32 %v1384_v62, %v1384_v62 }
 0xf22   :  { %v1388_v0 = vsel %vm77_vm0, %v1386_v47, 0.0 }
 0xf23   :  { %1389 = vadd.xlane.f32.xlu0 %v1388_v0 }
 0xf26   :  { %v1673_v60 = vld [vmem:[#allocation3] ss:$0 sm:$0xff] }
 0xf38   :  { %v1381_v2 = vpop.xlane.xlu0 %1380 }
 0xf39   :  { %v1383_v5 = vmul.f32 %v1381_v2, %v1878_v10 }
 0xf3b   :  { %v1385_v3 = vsub.f32 %v1371_v59, %v1383_v5 }
 0xf3d   :  { %v1387_v45 = vmul.f32 %v1385_v3, %v1385_v3 }
 0xf3f   :  { %v1391_v11 = vsel %vm77_vm0, %v1387_v45, 0.0 }
 0xf40   :  { %1392 = vadd.xlane.f32.xlu0 %v1391_v11 }
 0xf96   :  { %v1390_v8 = vpop.xlane.xlu0 %1389 }
 0xf97   :  { %v1394_v9 = vmul.f32 %v1390_v8, %v1878_v10 }
 0xf99   :  { %v1396_v12 = vadd.f32 1e-12, %v1394_v9 }
 0xf9b   :  { %1732 = vrsqrt.f32 %v1396_v12  ;;  %vm1404_vm8 = vweird.f32 %v1396_v12 }
 0xfa1   :  { %v1733_v13 = vpop.eup %1732 }
 0xfa2   :  { %v1399_v14 = vmul.f32 %v1733_v13, %v1396_v12  ;;  %vm1405_vm6 = vweird.f32 %v1733_v13 }
 0xfa3   :  { %vm1406_vm9 = vmor %vm1404_vm8, %vm1405_vm6 }
 0xfa4   :  { %v1400_v15 = vmul.f32 %v1733_v13, %v1399_v14 }
 0xfa6   :  { %v1401_v16 = vmul.f32 0.5, %v1400_v15 }
 0xfa8   :  { %v1402_v17 = vsub.f32 1.5, %v1401_v16 }
 0xfaa   :  { %v1403_v39 = vmul.f32 %v1733_v13, %v1402_v17 }
 0xfac   :  { %v1407_v19 = vsel %vm1406_vm9, %v1733_v13, %v1403_v39 }
 0xfad   :  { %v1418_v21 = vmul.f32 %v1407_v19, %v1384_v62 }
 0xfaf   :  { %v1423_v25 = vmul.f32 %v1668_v18, %v1418_v21 }
 0xfb1   :  { %v1428_v26 = vadd.f32 %v1669_v24, %v1423_v25 }
 0xfb3   :  { %1641 = vmatmul.msk.f32.vlgmr.msra.gmra.mxu3 %vm77_vm0, %v1428_v26  ;;  %v1393_v27 = vpop.xlane.xlu0 %1392 }
 0xfb4   :  { %v1395_v28 = vmul.f32 %v1393_v27, %v1878_v10  ;;  %v1472_v10 = vld [vmem:[%s2336_s18 + $0x18] sm:$0xff] }
 0xfb5   :  { %1495 = vmatpush.msrb.mxu0 %v1472_v10 }
 0xfb6   :  { %v1397_v29 = vadd.f32 1e-12, %v1395_v28 }
 0xfb7   :  { %1496 = vmatpush.msrb.mxu0 %v1471_v1 }
 0xfb8   :  { %1734 = vrsqrt.f32 %v1397_v29  ;;  %vm1414_vm5 = vweird.f32 %v1397_v29 }
 0xfb9   :  { %1497 = vmatpush.msrb.mxu0 %v1470_v22 }
 0xfbb   :  { %1498 = vmatpush.msrb.mxu0 %v1469_v41 }
 0xfbe   :  { %v1735_v30 = vpop.eup %1734 }
 0xfbf   :  { %v1409_v23 = vmul.f32 %v1735_v30, %v1397_v29  ;;  %vm1415_vm10 = vweird.f32 %v1735_v30 }
 0xfc0   :  { %vm1416_vm7 = vmor %vm1414_vm5, %vm1415_vm10 }
 0xfc1   :  { %v1410_v31 = vmul.f32 %v1735_v30, %v1409_v23 }
 0xfc3   :  { %v1411_v32 = vmul.f32 0.5, %v1410_v31 }
 0xfc5   :  { %v1412_v33 = vsub.f32 1.5, %v1411_v32 }
 0xfc7   :  { %v1413_v34 = vmul.f32 %v1735_v30, %v1412_v33 }
 0xfc9   :  { %v1417_v36 = vsel %vm1416_vm7, %v1735_v30, %v1413_v34 }
 0xfca   :  { %v1419_v52 = vmul.f32 %v1417_v36, %v1385_v3 }
 0xfcc   :  { %v1424_v38 = vmul.f32 %v1668_v18, %v1419_v52 }
 0xfce   :  { %v1429_v40 = vadd.f32 %v1669_v24, %v1424_v38 }
 0xfd0   :  { %1642 = vmatmul.msk.f32.gmra.mxu3 %vm77_vm0, %v1429_v40 }
0x1036   :  { %v1461_v44 = vpop.f32.mrf.mxu3 }
0x1037   :  { %v1462_v46 = vadd.f32 %v1670_v43, %v1461_v44 }
0x1039   :  { %1736 = vtanh.f32 %v1462_v46 }
0x103f   :  { %v1737_v49 = vpop.eup %1736 }
0x1040   :  { %1643 = vmatmul.msk.f32.vlgmr.msrb.gmra.mxu0 %vm77_vm0, %v1737_v49 }
0x1053   :  { %v1464_v53 = vpop.f32.mrf.mxu3 }
0x1054   :  { %v1465_v51 = vadd.f32 %v1670_v43, %v1464_v53 }
0x1056   :  { %1738 = vtanh.f32 %v1465_v51 }
0x105c   :  { %v1739_v63 = vpop.eup %1738 }
0x105d   :  { %1644 = vmatmul.msk.f32.gmra.mxu0 %vm77_vm0, %v1739_v63 }
0x10bd   :  { %v1500_v55 = vpop.f32.mrf.mxu0 }
0x10be   :  { %v1501_v48 = vadd.f32 %v1671_v54, %v1500_v55 }
0x10c0   :  { %v1506_v42 = vmax.f32 %v1501_v48, 0.0 }
0x10c2   :  { %v1512_v57 = vmul.f32 %v1672_v20, %v1506_v42 }
0x10c4   :  { %1514 = vadd.xlane.f32.xlu0 %v1512_v57 }
0x10da   :  { %v1503_v37 = vpop.f32.mrf.mxu0 }
0x10db   :  { %v1504_v58 = vadd.f32 %v1671_v54, %v1503_v37 }
0x10dd   :  { %v1507_v59 = vmax.f32 %v1504_v58, 0.0 }
0x10df   :  { %v1513_v56 = vmul.f32 %v1672_v20, %v1507_v59 }
0x10e1   :  { %1516 = vadd.xlane.f32.xlu2 %v1513_v56 }
0x1137   :  { %v1515_v61 = vpop.xlane.xlu0 %1514 }
0x1138   :  { %v1522_v62 = vadd.f32 %v1673_v60, %v1515_v61 }
0x113a   :  { %v1524_v47 = vsub.f32 0.0, %v1522_v62 }
0x113c   :  { %v1526_v0 = vmul.f32 1.442695, %v1524_v47 }
0x113e   :  { %1740 = vpow2.f32 %v1526_v0 }
0x1144   :  { %v1741_v2 = vpop.eup %1740 }
0x1145   :  { %v1530_v5 = vadd.f32 1.0, %v1741_v2 }
0x1147   :  { %1742 = vrcp.f32 %v1530_v5  ;;  %v1543_v50 = vand.u32 2147483648, %v1530_v5  ;;  %v1541_v6 = vand.u32 2147483647, %v1530_v5  ;;  %vm1537_vm11 = vweird.f32 %v1530_v5 }
0x1149   :  { %v1544_v9 = vor.u32 1.1754944e-38, %v1543_v50  ;;  %vm1542_vm14 = vcmp.eq.f32.partialorder %v1541_v6, 8.507059e+37 }
0x114d   :  { %v1743_v3 = vpop.eup %1742 }
0x114e   :  { %v1533_v45 = vmul.f32 %v1743_v3, %v1530_v5  ;;  %vm1538_vm0 = vweird.f32 %v1743_v3 }
0x114f   :  { %vm1539_vm13 = vmor %vm1537_vm11, %vm1538_vm0 }
0x1150   :  { %v1534_v11 = vsub.f32 1.0, %v1533_v45 }
0x1152   :  { %v1535_v4 = vmul.f32 %v1743_v3, %v1534_v11 }
0x1154   :  { %v1536_v7 = vadd.f32 %v1743_v3, %v1535_v4  ;;  %v1517_v8 = vpop.xlane.xlu2 %1516 }
0x1155   :  { %v1523_v12 = vadd.f32 %v1673_v60, %v1517_v8 }
0x1156   :  { %v1540_v13 = vsel %vm1539_vm13, %v1743_v3, %v1536_v7 }
0x1157   :  { %v1545_v14 = vsel %vm1542_vm14, %v1544_v9, %v1540_v13  ;;  %v1525_v15 = vsub.f32 0.0, %v1523_v12 }
0x1158   :  { %1563 = vst.msk [vmem:[%s2339_s22] sm:$0x1] %vm1562_vm12, %v1545_v14 }
0x1159   :  { %v1528_v16 = vmul.f32 1.442695, %v1525_v15 }
0x115b   :  { %1744 = vpow2.f32 %v1528_v16 }
0x1161   :  { %v1745_v17 = vpop.eup %1744 }
0x1162   :  { %v1531_v39 = vadd.f32 1.0, %v1745_v17 }
0x1164   :  { %1746 = vrcp.f32 %v1531_v39  ;;  %v1558_v24 = vand.u32 2147483648, %v1531_v39  ;;  %v1556_v26 = vand.u32 2147483647, %v1531_v39  ;;  %vm1552_vm1 = vweird.f32 %v1531_v39 }
0x1166   :  { %v1559_v28 = vor.u32 1.1754944e-38, %v1558_v24  ;;  %vm1557_vm3 = vcmp.eq.f32.partialorder %v1556_v26, 8.507059e+37 }
0x116a   :  { %v1747_v18 = vpop.eup %1746 }
0x116b   :  { %v1548_v19 = vmul.f32 %v1747_v18, %v1531_v39  ;;  %vm1553_vm15 = vweird.f32 %v1747_v18 }
0x116c   :  { %vm1554_vm2 = vmor %vm1552_vm1, %vm1553_vm15 }
0x116d   :  { %v1549_v21 = vsub.f32 1.0, %v1548_v19 }
0x116f   :  { %v1550_v25 = vmul.f32 %v1747_v18, %v1549_v21 }
0x1171   :  { %v1551_v27 = vadd.f32 %v1747_v18, %v1550_v25 }
0x1173   :  { %v1555_v29 = vsel %vm1554_vm2, %v1747_v18, %v1551_v27 }
0x1174   :  { %v1560_v30 = vsel %vm1557_vm3, %v1559_v28, %v1555_v29 }
0x1175   :  { %1564 = vst.msk [vmem:[%s2339_s22 + $0x1] sm:$0x1] %vm1562_vm12, %v1560_v30 }

</bundles_post_ra>
